<compile_context>
chip_gen: v5e
topology: v5e:2x2
jax: 0.10.0
libtpu: 0.0.40
codegen_flags: <defaults>
</compile_context>

<pallas_src>
import functools

import jax
import jax.numpy as jnp
import numpy as np
from jax import lax
from jax.experimental import pallas as pl
from jax.experimental.pallas import tpu as pltpu


# ---------------------------------------------------------------------------
# Host-side weight packing (tiny one-off einsums under jit)
# ---------------------------------------------------------------------------
def _convt_matrices(up_w, up_b, W1):
    """ConvTranspose2d(k=2, s=2) as two block-diagonal matmuls.

    up_w: (Cin, Cup, 2, 2) -> Wt: (2, W1*Cin, 2*W1*Cup) such that
    out_row(2h+kh) = x_row(h) @ Wt[kh] + bias_lane, lanes ordered (w2, cup).
    """
    E = np.zeros((W1, 2, 2 * W1), np.float32)
    for w in range(W1):
        for kw in range(2):
            E[w, kw, 2 * w + kw] = 1.0
    Wt = jnp.einsum("wkv,cohk->hwcvo", jnp.asarray(E), up_w.astype(jnp.float32))
    Cin, Cup = up_w.shape[0], up_w.shape[1]
    Wt = Wt.reshape(2, W1 * Cin, 2 * W1 * Cup)
    bt = jnp.tile(up_b.astype(jnp.float32), 2 * W1)[None, :]
    return Wt, bt


def _row_interleave_matrices(H1):
    """P[kh] @ Y_kh scatters ConvT rows h -> 2h+kh (even/odd row interleave)."""
    P = np.zeros((2, 2 * H1, H1), np.float32)
    for h in range(H1):
        P[0, 2 * h, h] = 1.0
        P[1, 2 * h + 1, h] = 1.0
    return jnp.asarray(P)


def _band3x3(w_oihw, W):
    """3x3 conv (stride 1, pad 1, no bias) as 3 banded matmuls over (w, c) lanes.

    w_oihw: (Cout, Cin, 3, 3) -> B: (3, W*Cin, W*Cout) with
    out_row(h) = sum_kh x_padrow(h + kh) @ B[kh].
    Column zero-padding is baked into the band structure (off-band entries = 0).
    """
    F = np.zeros((W, 3, W), np.float32)
    for w in range(W):
        for kw in range(3):
            wp = w + kw - 1
            if 0 <= wp < W:
                F[wp, kw, w] = 1.0
    B = jnp.einsum("vkw,ochk->hvcwo", jnp.asarray(F), w_oihw.astype(jnp.float32))
    Cout, Cin = w_oihw.shape[0], w_oihw.shape[1]
    return B.reshape(3, W * Cin, W * Cout)


# ---------------------------------------------------------------------------
# Pallas kernels
# ---------------------------------------------------------------------------
def _conv1_fused_kernel(x1_ref, x2_ref, wt_ref, bt_ref, p_ref, wb_ref,
                        o_ref, sum_ref, ssq_ref, xcat_ref,
                        *, H1, H2, W2C2, r0, c0, Kup):
    """Fused ConvTranspose(k2,s2) + F.pad + concat + conv1 (+ BN1 stats), one image."""
    # Zero the staging buffer: covers conv zero-pad rows and any F.pad fringe.
    xcat_ref[...] = jnp.zeros_like(xcat_ref)

    # Skip connection: x2 occupies lanes [0, W2*C2) of rows 1..H2.
    xcat_ref[pl.ds(1, H2), 0:W2C2] = x2_ref[...]

    # ConvTranspose2d: two block-diagonal matmuls produce even / odd output rows;
    # two tiny selection matmuls interleave them (no in-kernel reshape/relayout).
    x1 = x1_ref[...]
    y0 = jnp.dot(x1, wt_ref[0], preferred_element_type=jnp.float32) + bt_ref[...]
    y1 = jnp.dot(x1, wt_ref[1], preferred_element_type=jnp.float32) + bt_ref[...]
    yy = (jnp.dot(p_ref[0], y0, preferred_element_type=jnp.float32)
          + jnp.dot(p_ref[1], y1, preferred_element_type=jnp.float32))
    xcat_ref[pl.ds(r0, 2 * H1), c0:c0 + Kup] = yy

    # conv1: three K = W*Ctot banded matmuls, single accumulator.
    acc = jnp.dot(xcat_ref[pl.ds(0, H2), :], wb_ref[0],
                  preferred_element_type=jnp.float32)
    acc = acc + jnp.dot(xcat_ref[pl.ds(1, H2), :], wb_ref[1],
                        preferred_element_type=jnp.float32)
    acc = acc + jnp.dot(xcat_ref[pl.ds(2, H2), :], wb_ref[2],
                        preferred_element_type=jnp.float32)

    # Per-image BatchNorm partial statistics (per (w, c) lane; the tiny per-channel
    # reduction over w happens on the host side).
    # TODO(synk): single-pass E[x^2]-E[x]^2 in f32; use a centered second pass if
    #             this is ever run at scales where cancellation matters.
    sum_ref[...] = jnp.sum(acc, axis=0, keepdims=True)
    ssq_ref[...] = jnp.sum(acc * acc, axis=0, keepdims=True)

    # Raw conv1 output, written directly in the zero-row-padded layout conv2 reads.
    zrow = jnp.zeros((1, acc.shape[1]), jnp.float32)
    o_ref[0:1, :] = zrow
    o_ref[pl.ds(1, H2), :] = acc
    o_ref[H2 + 1:H2 + 2, :] = zrow


def _conv2_kernel(x_ref, wb_ref, scale_ref, shift_ref,
                  o_ref, sum_ref, ssq_ref, xact_ref, *, H2):
    """BN1 affine + ReLU fused into conv2's input path; emits BN2 stats."""
    zrow = jnp.zeros((1, xact_ref.shape[1]), jnp.float32)
    xact_ref[0:1, :] = zrow                      # keep zero-pad rows exactly zero
    xact_ref[pl.ds(1, H2), :] = jnp.maximum(
        x_ref[pl.ds(1, H2), :] * scale_ref[...] + shift_ref[...], 0.0)
    xact_ref[H2 + 1:H2 + 2, :] = zrow

    acc = jnp.dot(xact_ref[pl.ds(0, H2), :], wb_ref[0],
                  preferred_element_type=jnp.float32)
    acc = acc + jnp.dot(xact_ref[pl.ds(1, H2), :], wb_ref[1],
                        preferred_element_type=jnp.float32)
    acc = acc + jnp.dot(xact_ref[pl.ds(2, H2), :], wb_ref[2],
                        preferred_element_type=jnp.float32)

    sum_ref[...] = jnp.sum(acc, axis=0, keepdims=True)
    ssq_ref[...] = jnp.sum(acc * acc, axis=0, keepdims=True)
    o_ref[...] = acc


def _bn_relu_kernel(x_ref, scale_ref, shift_ref, o_ref):
    # Lane-dense elementwise affine + ReLU.
    o_ref[...] = jnp.maximum(x_ref[...] * scale_ref[...] + shift_ref[...], 0.0)


# ---------------------------------------------------------------------------
# pallas_call wrappers
# ---------------------------------------------------------------------------
def _upsample_concat_conv1(x1f, x2f, Wt, bt, P, B1, *, H1, H2, W2, C2, Cup, dY, dX):
    N = x1f.shape[0]
    W1K = x1f.shape[2]            # W1 * Cin1
    WCtot = B1.shape[1]           # W2 * (C2 + Cup)
    WCmid = B1.shape[2]           # W2 * Cmid
    W2C2 = W2 * C2
    Kup = Wt.shape[2]             # 2 * W1 * Cup
    r0 = 1 + dY // 2
    c0 = W2C2 + (dX // 2) * Cup

    kernel = functools.partial(_conv1_fused_kernel, H1=H1, H2=H2, W2C2=W2C2,
                               r0=r0, c0=c0, Kup=Kup)
    return pl.pallas_call(
        kernel,
        out_shape=(
            jax.ShapeDtypeStruct((N, H2 + 2, WCmid), jnp.float32),
            jax.ShapeDtypeStruct((N, 1, WCmid), jnp.float32),
            jax.ShapeDtypeStruct((N, 1, WCmid), jnp.float32),
        ),
        grid=(N,),
        in_specs=[
            pl.BlockSpec((None, H1, W1K), lambda n: (n, 0, 0)),
            pl.BlockSpec((None, H2, W2C2), lambda n: (n, 0, 0)),
            pl.BlockSpec((2, W1K, Kup), lambda n: (0, 0, 0)),
            pl.BlockSpec((1, Kup), lambda n: (0, 0)),
            pl.BlockSpec((2, 2 * H1, H1), lambda n: (0, 0, 0)),
            pl.BlockSpec((3, WCtot, WCmid), lambda n: (0, 0, 0)),
        ],
        out_specs=(
            pl.BlockSpec((None, H2 + 2, WCmid), lambda n: (n, 0, 0)),
            pl.BlockSpec((None, 1, WCmid), lambda n: (n, 0, 0)),
            pl.BlockSpec((None, 1, WCmid), lambda n: (n, 0, 0)),
        ),
        scratch_shapes=[pltpu.VMEM((H2 + 2, WCtot), jnp.float32)],
        compiler_params=pltpu.CompilerParams(dimension_semantics=("parallel",)),
    )(x1f, x2f, Wt, bt, P, B1)


def _conv2(h1, B2, scale_lane, shift_lane, *, H2):
    N = h1.shape[0]
    WCmid = h1.shape[2]
    WCout = B2.shape[2]
    kernel = functools.partial(_conv2_kernel, H2=H2)
    return pl.pallas_call(
        kernel,
        out_shape=(
            jax.ShapeDtypeStruct((N, H2, WCout), jnp.float32),
            jax.ShapeDtypeStruct((N, 1, WCout), jnp.float32),
            jax.ShapeDtypeStruct((N, 1, WCout), jnp.float32),
        ),
        grid=(N,),
        in_specs=[
            pl.BlockSpec((None, H2 + 2, WCmid), lambda n: (n, 0, 0)),
            pl.BlockSpec((3, WCmid, WCout), lambda n: (0, 0, 0)),
            pl.BlockSpec((1, WCmid), lambda n: (0, 0)),
            pl.BlockSpec((1, WCmid), lambda n: (0, 0)),
        ],
        out_specs=(
            pl.BlockSpec((None, H2, WCout), lambda n: (n, 0, 0)),
            pl.BlockSpec((None, 1, WCout), lambda n: (n, 0, 0)),
            pl.BlockSpec((None, 1, WCout), lambda n: (n, 0, 0)),
        ),
        scratch_shapes=[pltpu.VMEM((H2 + 2, WCmid), jnp.float32)],
        compiler_params=pltpu.CompilerParams(dimension_semantics=("parallel",)),
    )(h1, B2, scale_lane, shift_lane)


def _bn_relu(x_flat, scale_lane, shift_lane):
    M, Lc = x_flat.shape
    # >=2 grid steps when cleanly possible (keeps both v7x TensorCores busy),
    # blocks capped at ~2 MiB.
    bm = M
    if M % 2 == 0 and (M // 2) % 8 == 0:
        bm = M // 2
    while bm > 4096 and bm % 2 == 0 and (bm // 2) % 8 == 0:
        bm //= 2
    return pl.pallas_call(
        _bn_relu_kernel,
        out_shape=jax.ShapeDtypeStruct((M, Lc), jnp.float32),
        grid=(M // bm,),
        in_specs=[
            pl.BlockSpec((bm, Lc), lambda i: (i, 0)),
            pl.BlockSpec((1, Lc), lambda i: (0, 0)),
            pl.BlockSpec((1, Lc), lambda i: (0, 0)),
        ],
        out_specs=pl.BlockSpec((bm, Lc), lambda i: (i, 0)),
        compiler_params=pltpu.CompilerParams(dimension_semantics=("parallel",)),
    )(x_flat, scale_lane, shift_lane)


def _bn_scale_shift(sum_lane, ssq_lane, count, C, gamma, beta, eps):
    # Combine the per-image, per-(w,c)-lane partial sums emitted by the conv
    # kernels into per-channel BatchNorm scale/shift (tiny arrays).
    s = jnp.sum(sum_lane.reshape(-1, C), axis=0)
    ss = jnp.sum(ssq_lane.reshape(-1, C), axis=0)
    mean = s / count
    var = ss / count - mean * mean            # biased variance (training-mode BN)
    scale = gamma / jnp.sqrt(var + eps)
    shift = beta - mean * scale
    return scale, shift


# ---------------------------------------------------------------------------
# Full Upscaling forward (NCHW public interface, like PyTorch)
# ---------------------------------------------------------------------------
def upscaling_forward(params, x1_nchw, x2_nchw, eps=1e-5):
    x1 = jnp.transpose(x1_nchw, (0, 2, 3, 1)).astype(jnp.float32)   # NHWC
    x2 = jnp.transpose(x2_nchw, (0, 2, 3, 1)).astype(jnp.float32)
    N, H1, W1, Cin1 = x1.shape
    _, H2, W2, C2 = x2.shape
    Cup = params["up_w"].shape[1]
    Cmid = params["conv1_w"].shape[0]
    Cout = params["conv2_w"].shape[0]
    dY, dX = H2 - 2 * H1, W2 - 2 * W1
    assert dY >= 0 and dX >= 0
    assert params["conv1_w"].shape[1] == C2 + Cup

    # Row-flattened (w, c) lane layouts -- pure reshapes of the NHWC views.
    x1f = x1.reshape(N, H1, W1 * Cin1)
    x2f = x2.reshape(N, H2, W2 * C2)

    # Packed weights (banded / block-diagonal matmul forms).
    Wt, bt = _convt_matrices(params["up_w"], params["up_b"], W1)
    P = _row_interleave_matrices(H1)
    B1 = jnp.concatenate(
        [_band3x3(params["conv1_w"][:, :C2], W2),          # skip-connection channels
         _band3x3(params["conv1_w"][:, C2:], W2)], axis=1)  # upsampled channels
    B2 = _band3x3(params["conv2_w"], W2)

    # Fused ConvT + pad + concat + conv1 (+ BN1 partial stats).
    h1, s1, ss1 = _upsample_concat_conv1(
        x1f, x2f, Wt, bt, P, B1,
        H1=H1, H2=H2, W2=W2, C2=C2, Cup=Cup, dY=dY, dX=dX)
    scale1, shift1 = _bn_scale_shift(s1, ss1, N * H2 * W2, Cmid,
                                     params["bn1_gamma"], params["bn1_beta"], eps)

    # conv2 with BN1 affine + ReLU fused into its input path (+ BN2 partial stats).
    h2, s2, ss2 = _conv2(h1, B2,
                         jnp.tile(scale1, W2)[None, :],
                         jnp.tile(shift1, W2)[None, :], H2=H2)
    scale2, shift2 = _bn_scale_shift(s2, ss2, N * H2 * W2, Cout,
                                     params["bn2_gamma"], params["bn2_beta"], eps)

    # Final BN2 + ReLU, lane-dense.
    Mtot = N * H2 * W2 * Cout
    if Mtot % 128 == 0 and 128 % Cout == 0:
        xf = h2.reshape(Mtot // 128, 128)
        sc = jnp.tile(scale2, 128 // Cout)[None, :]
        sh = jnp.tile(shift2, 128 // Cout)[None, :]
    else:
        xf = h2.reshape(N * H2, W2 * Cout)
        sc = jnp.tile(scale2, W2)[None, :]
        sh = jnp.tile(shift2, W2)[None, :]
    out = _bn_relu(xf, sc, sh).reshape(N, H2, W2, Cout)
    # TODO(synk): final NHWC->NCHW relayout left to XLA (pure interface conversion).
    return jnp.transpose(out, (0, 3, 1, 2))


# ---------------------------------------------------------------------------
# Pure-JAX reference (different code path) for validation
# ---------------------------------------------------------------------------
def ref_forward(params, x1_nchw, x2_nchw, eps=1e-5):
    x1 = jnp.transpose(x1_nchw, (0, 2, 3, 1)).astype(jnp.float32)
    x2 = jnp.transpose(x2_nchw, (0, 2, 3, 1)).astype(jnp.float32)

    w = params["up_w"]                                     # (Cin, Cup, 2, 2)
    N, H, W, Cin = x1.shape
    Cup = w.shape[1]
    y = jnp.einsum("nhwi,iokl->nhkwlo", x1, w)
    y = y.reshape(N, 2 * H, 2 * W, Cup) + params["up_b"]

    H2, W2 = x2.shape[1], x2.shape[2]
    dY, dX = H2 - y.shape[1], W2 - y.shape[2]
    y = jnp.pad(y, ((0, 0), (dY // 2, dY - dY // 2), (dX // 2, dX - dX // 2), (0, 0)))
    x = jnp.concatenate([x2, y], axis=-1)

    def conv3x3(h, w_oihw):
        w_hwio = jnp.transpose(w_oihw, (2, 3, 1, 0))
        return lax.conv_general_dilated(
            h, w_hwio, (1, 1), ((1, 1), (1, 1)),
            dimension_numbers=("NHWC", "HWIO", "NHWC"),
            preferred_element_type=jnp.float32)

    def bn_relu(h, g, b):
        m = jnp.mean(h, axis=(0, 1, 2))
        v = jnp.var(h, axis=(0, 1, 2))
        return jnp.maximum((h - m) / jnp.sqrt(v + eps) * g + b, 0.0)

    h = bn_relu(conv3x3(x, params["conv1_w"]), params["bn1_gamma"], params["bn1_beta"])
    h = bn_relu(conv3x3(h, params["conv2_w"]), params["bn2_gamma"], params["bn2_beta"])
    return jnp.transpose(h, (0, 3, 1, 2))


# ---------------------------------------------------------------------------
if __name__ == "__main__":
    # Upscaling(in_channels=8, out_channels=4); x1: (N, 8, 8, 8), x2: (N, 4, 16, 16)
    in_channels, out_channels = 8, 4
    mid_channels = out_channels                     # ConvBlock default
    N, H1, W1 = 2, 8, 8
    H2, W2 = 2 * H1, 2 * W1

    key = jax.random.PRNGKey(0)
    ks = jax.random.split(key, 6)
    params = {
        "up_w": 0.1 * jax.random.normal(ks[0], (in_channels, in_channels // 2, 2, 2), jnp.float32),
        "up_b": 0.1 * jax.random.normal(ks[1], (in_channels // 2,), jnp.float32),
        "conv1_w": 0.1 * jax.random.normal(ks[2], (mid_channels, in_channels, 3, 3), jnp.float32),
        "conv2_w": 0.1 * jax.random.normal(ks[3], (out_channels, mid_channels, 3, 3), jnp.float32),
        "bn1_gamma": jnp.ones((mid_channels,), jnp.float32),
        "bn1_beta": jnp.zeros((mid_channels,), jnp.float32),
        "bn2_gamma": jnp.ones((out_channels,), jnp.float32),
        "bn2_beta": jnp.zeros((out_channels,), jnp.float32),
    }

    x1 = jax.random.normal(ks[4], (N, in_channels, H1, W1), jnp.float32)
    x2 = jax.random.normal(ks[5], (N, in_channels // 2, H2, W2), jnp.float32)

    out = jax.block_until_ready(jax.jit(upscaling_forward)(params, x1, x2))
    ref = jax.block_until_ready(ref_forward(params, x1, x2))

    assert out.shape == (N, out_channels, H2, W2), out.shape
    assert bool(jnp.all(jnp.isfinite(out)))
    err = float(jnp.max(jnp.abs(out - ref)))
    assert jnp.allclose(out, ref, atol=1e-2, rtol=1e-2), err

    print("KERNEL_OK")
</pallas_src>

<mosaic_0001>
module attributes {stable_mosaic.version = 11 : i64} {
  func.func @_conv1_fused_kernel(%arg0: i32, %arg1: memref<1x8x64xf32, #tpu.memory_space<vmem>>, %arg2: memref<1x16x64xf32, #tpu.memory_space<vmem>>, %arg3: memref<2x64x64xf32, #tpu.memory_space<vmem>>, %arg4: memref<1x64xf32, #tpu.memory_space<vmem>>, %arg5: memref<2x16x8xf32, #tpu.memory_space<vmem>>, %arg6: memref<3x128x64xf32, #tpu.memory_space<vmem>>, %arg7: memref<1x18x64xf32, #tpu.memory_space<vmem>>, %arg8: memref<1x1x64xf32, #tpu.memory_space<vmem>>, %arg9: memref<1x1x64xf32, #tpu.memory_space<vmem>>, %arg10: memref<18x128xf32, #tpu.memory_space<vmem>>) attributes {dimension_semantics = [#tpu.dimension_semantics<parallel>], iteration_bounds = array<i64: 2>, scalar_prefetch = 0 : i64, scratch_operands = 1 : i64, tpu.core_type = #tpu.core_type<tc>, window_params = [{transform_indices = @transform_0, window_bounds = array<i64: 1, 8, 64>}, {transform_indices = @transform_1, window_bounds = array<i64: 1, 16, 64>}, {pipeline_mode = #tpu.pipeline_mode<synchronous>, transform_indices = @transform_2, window_bounds = array<i64: 2, 64, 64>}, {pipeline_mode = #tpu.pipeline_mode<synchronous>, transform_indices = @transform_3, window_bounds = array<i64: 1, 64>}, {pipeline_mode = #tpu.pipeline_mode<synchronous>, transform_indices = @transform_4, window_bounds = array<i64: 2, 16, 8>}, {pipeline_mode = #tpu.pipeline_mode<synchronous>, transform_indices = @transform_5, window_bounds = array<i64: 3, 128, 64>}, {transform_indices = @transform_6, window_bounds = array<i64: 1, 18, 64>}, {transform_indices = @transform_7, window_bounds = array<i64: 1, 1, 64>}, {transform_indices = @transform_8, window_bounds = array<i64: 1, 1, 64>}]} {
    %cst = arith.constant 0.000000e+00 : f32
    %0 = vector.broadcast %cst : f32 to vector<18x128xf32>
    %c0 = arith.constant 0 : index
    %c0_0 = arith.constant 0 : index
    %1 = vector.load %arg10[%c0, %c0_0] : memref<18x128xf32, #tpu.memory_space<vmem>>, vector<18x128xf32>
    tpu.vector_store %arg10[%c0, %c0_0], %0 {strides = array<i32>} : memref<18x128xf32, #tpu.memory_space<vmem>>, vector<18x128xf32>,
    %c0_1 = arith.constant 0 : index
    %c0_2 = arith.constant 0 : index
    %c0_3 = arith.constant 0 : index
    %2 = vector.load %arg2[%c0_1, %c0_2, %c0_3] : memref<1x16x64xf32, #tpu.memory_space<vmem>>, vector<1x16x64xf32>
    %3 = vector.shape_cast %2 : vector<1x16x64xf32> to vector<16x64xf32>
    %c1 = arith.constant 1 : index
    %c0_4 = arith.constant 0 : index
    %4 = vector.load %arg10[%c1, %c0_4] : memref<18x128xf32, #tpu.memory_space<vmem>>, vector<16x64xf32>
    tpu.vector_store %arg10[%c1, %c0_4], %3 {strides = array<i32>} : memref<18x128xf32, #tpu.memory_space<vmem>>, vector<16x64xf32>,
    %c0_5 = arith.constant 0 : index
    %c0_6 = arith.constant 0 : index
    %c0_7 = arith.constant 0 : index
    %5 = vector.load %arg1[%c0_5, %c0_6, %c0_7] : memref<1x8x64xf32, #tpu.memory_space<vmem>>, vector<1x8x64xf32>
    %6 = vector.shape_cast %5 : vector<1x8x64xf32> to vector<8x64xf32>
    %c0_8 = arith.constant 0 : index
    %c0_9 = arith.constant 0 : index
    %c0_10 = arith.constant 0 : index
    %7 = vector.load %arg3[%c0_8, %c0_9, %c0_10] : memref<2x64x64xf32, #tpu.memory_space<vmem>>, vector<1x64x64xf32>
    %8 = vector.shape_cast %7 : vector<1x64x64xf32> to vector<64x64xf32>
    %cst_11 = arith.constant dense<0.000000e+00> : vector<8x64xf32>
    %9 = tpu.matmul %6, %8, %cst_11 {dimension_numbers = #tpu.dot_dimension_numbers<[1], [0], [0], [1], [0, 0, 1, 1], [], []>} : vector<8x64xf32>, vector<64x64xf32>, vector<8x64xf32> -> vector<8x64xf32>
    %c0_12 = arith.constant 0 : index
    %c0_13 = arith.constant 0 : index
    %10 = vector.load %arg4[%c0_12, %c0_13] : memref<1x64xf32, #tpu.memory_space<vmem>>, vector<1x64xf32>
    %11 = vector.broadcast %10 : vector<1x64xf32> to vector<8x64xf32>
    %12 = arith.addf %9, %11 : vector<8x64xf32>
    %c1_14 = arith.constant 1 : index
    %c0_15 = arith.constant 0 : index
    %c0_16 = arith.constant 0 : index
    %13 = vector.load %arg3[%c1_14, %c0_15, %c0_16] : memref<2x64x64xf32, #tpu.memory_space<vmem>>, vector<1x64x64xf32>
    %14 = vector.shape_cast %13 : vector<1x64x64xf32> to vector<64x64xf32>
    %cst_17 = arith.constant dense<0.000000e+00> : vector<8x64xf32>
    %15 = tpu.matmul %6, %14, %cst_17 {dimension_numbers = #tpu.dot_dimension_numbers<[1], [0], [0], [1], [0, 0, 1, 1], [], []>} : vector<8x64xf32>, vector<64x64xf32>, vector<8x64xf32> -> vector<8x64xf32>
    %c0_18 = arith.constant 0 : index
    %c0_19 = arith.constant 0 : index
    %16 = vector.load %arg4[%c0_18, %c0_19] : memref<1x64xf32, #tpu.memory_space<vmem>>, vector<1x64xf32>
    %17 = vector.broadcast %16 : vector<1x64xf32> to vector<8x64xf32>
    %18 = arith.addf %15, %17 : vector<8x64xf32>
    %c0_20 = arith.constant 0 : index
    %c0_21 = arith.constant 0 : index
    %c0_22 = arith.constant 0 : index
    %19 = vector.load %arg5[%c0_20, %c0_21, %c0_22] : memref<2x16x8xf32, #tpu.memory_space<vmem>>, vector<1x16x8xf32>
    %20 = vector.shape_cast %19 : vector<1x16x8xf32> to vector<16x8xf32>
    %cst_23 = arith.constant dense<0.000000e+00> : vector<16x64xf32>
    %21 = tpu.matmul %20, %12, %cst_23 {dimension_numbers = #tpu.dot_dimension_numbers<[1], [0], [0], [1], [0, 0, 1, 1], [], []>} : vector<16x8xf32>, vector<8x64xf32>, vector<16x64xf32> -> vector<16x64xf32>
    %c1_24 = arith.constant 1 : index
    %c0_25 = arith.constant 0 : index
    %c0_26 = arith.constant 0 : index
    %22 = vector.load %arg5[%c1_24, %c0_25, %c0_26] : memref<2x16x8xf32, #tpu.memory_space<vmem>>, vector<1x16x8xf32>
    %23 = vector.shape_cast %22 : vector<1x16x8xf32> to vector<16x8xf32>
    %cst_27 = arith.constant dense<0.000000e+00> : vector<16x64xf32>
    %24 = tpu.matmul %23, %18, %cst_27 {dimension_numbers = #tpu.dot_dimension_numbers<[1], [0], [0], [1], [0, 0, 1, 1], [], []>} : vector<16x8xf32>, vector<8x64xf32>, vector<16x64xf32> -> vector<16x64xf32>
    %25 = arith.addf %21, %24 : vector<16x64xf32>
    %c1_28 = arith.constant 1 : index
    %c64 = arith.constant 64 : index
    %26 = vector.load %arg10[%c1_28, %c64] : memref<18x128xf32, #tpu.memory_space<vmem>>, vector<16x64xf32>
    tpu.vector_store %arg10[%c1_28, %c64], %25 {strides = array<i32>} : memref<18x128xf32, #tpu.memory_space<vmem>>, vector<16x64xf32>,
    %c0_29 = arith.constant 0 : index
    %c0_30 = arith.constant 0 : index
    %27 = vector.load %arg10[%c0_29, %c0_30] : memref<18x128xf32, #tpu.memory_space<vmem>>, vector<16x128xf32>
    %c0_31 = arith.constant 0 : index
    %c0_32 = arith.constant 0 : index
    %c0_33 = arith.constant 0 : index
    %28 = vector.load %arg6[%c0_31, %c0_32, %c0_33] : memref<3x128x64xf32, #tpu.memory_space<vmem>>, vector<1x128x64xf32>
    %29 = vector.shape_cast %28 : vector<1x128x64xf32> to vector<128x64xf32>
    %cst_34 = arith.constant dense<0.000000e+00> : vector<16x64xf32>
    %30 = tpu.matmul %27, %29, %cst_34 {dimension_numbers = #tpu.dot_dimension_numbers<[1], [0], [0], [1], [0, 0, 1, 1], [], []>} : vector<16x128xf32>, vector<128x64xf32>, vector<16x64xf32> -> vector<16x64xf32>
    %c1_35 = arith.constant 1 : index
    %c0_36 = arith.constant 0 : index
    %31 = vector.load %arg10[%c1_35, %c0_36] : memref<18x128xf32, #tpu.memory_space<vmem>>, vector<16x128xf32>
    %c1_37 = arith.constant 1 : index
    %c0_38 = arith.constant 0 : index
    %c0_39 = arith.constant 0 : index
    %32 = vector.load %arg6[%c1_37, %c0_38, %c0_39] : memref<3x128x64xf32, #tpu.memory_space<vmem>>, vector<1x128x64xf32>
    %33 = vector.shape_cast %32 : vector<1x128x64xf32> to vector<128x64xf32>
    %cst_40 = arith.constant dense<0.000000e+00> : vector<16x64xf32>
    %34 = tpu.matmul %31, %33, %cst_40 {dimension_numbers = #tpu.dot_dimension_numbers<[1], [0], [0], [1], [0, 0, 1, 1], [], []>} : vector<16x128xf32>, vector<128x64xf32>, vector<16x64xf32> -> vector<16x64xf32>
    %35 = arith.addf %30, %34 : vector<16x64xf32>
    %c2 = arith.constant 2 : index
    %c0_41 = arith.constant 0 : index
    %36 = vector.load %arg10[%c2, %c0_41] : memref<18x128xf32, #tpu.memory_space<vmem>>, vector<16x128xf32>
    %c2_42 = arith.constant 2 : index
    %c0_43 = arith.constant 0 : index
    %c0_44 = arith.constant 0 : index
    %37 = vector.load %arg6[%c2_42, %c0_43, %c0_44] : memref<3x128x64xf32, #tpu.memory_space<vmem>>, vector<1x128x64xf32>
    %38 = vector.shape_cast %37 : vector<1x128x64xf32> to vector<128x64xf32>
    %cst_45 = arith.constant dense<0.000000e+00> : vector<16x64xf32>
    %39 = tpu.matmul %36, %38, %cst_45 {dimension_numbers = #tpu.dot_dimension_numbers<[1], [0], [0], [1], [0, 0, 1, 1], [], []>} : vector<16x128xf32>, vector<128x64xf32>, vector<16x64xf32> -> vector<16x64xf32>
    %40 = arith.addf %35, %39 : vector<16x64xf32>
    %cst_46 = arith.constant dense<0.000000e+00> : vector<64xf32>
    %41 = vector.multi_reduction <add>, %40, %cst_46 [0] : vector<16x64xf32> to vector<64xf32>
    %42 = vector.shape_cast %41 : vector<64xf32> to vector<1x64xf32>
    %c0_47 = arith.constant 0 : index
    %c0_48 = arith.constant 0 : index
    %c0_49 = arith.constant 0 : index
    %43 = vector.load %arg8[%c0_47, %c0_48, %c0_49] : memref<1x1x64xf32, #tpu.memory_space<vmem>>, vector<1x1x64xf32>
    %44 = vector.shape_cast %43 : vector<1x1x64xf32> to vector<1x64xf32>
    %45 = vector.shape_cast %42 : vector<1x64xf32> to vector<1x1x64xf32>
    tpu.vector_store %arg8[%c0_47, %c0_48, %c0_49], %45 {strides = array<i32>} : memref<1x1x64xf32, #tpu.memory_space<vmem>>, vector<1x1x64xf32>,
    %46 = arith.mulf %40, %40 : vector<16x64xf32>
    %cst_50 = arith.constant dense<0.000000e+00> : vector<64xf32>
    %47 = vector.multi_reduction <add>, %46, %cst_50 [0] : vector<16x64xf32> to vector<64xf32>
    %48 = vector.shape_cast %47 : vector<64xf32> to vector<1x64xf32>
    %c0_51 = arith.constant 0 : index
    %c0_52 = arith.constant 0 : index
    %c0_53 = arith.constant 0 : index
    %49 = vector.load %arg9[%c0_51, %c0_52, %c0_53] : memref<1x1x64xf32, #tpu.memory_space<vmem>>, vector<1x1x64xf32>
    %50 = vector.shape_cast %49 : vector<1x1x64xf32> to vector<1x64xf32>
    %51 = vector.shape_cast %48 : vector<1x64xf32> to vector<1x1x64xf32>
    tpu.vector_store %arg9[%c0_51, %c0_52, %c0_53], %51 {strides = array<i32>} : memref<1x1x64xf32, #tpu.memory_space<vmem>>, vector<1x1x64xf32>,
    %cst_54 = arith.constant 0.000000e+00 : f32
    %52 = vector.broadcast %cst_54 : f32 to vector<1x64xf32>
    %c0_55 = arith.constant 0 : index
    %c0_56 = arith.constant 0 : index
    %c0_57 = arith.constant 0 : index
    %53 = vector.load %arg7[%c0_55, %c0_56, %c0_57] : memref<1x18x64xf32, #tpu.memory_space<vmem>>, vector<1x1x64xf32>
    %54 = vector.shape_cast %53 : vector<1x1x64xf32> to vector<1x64xf32>
    %55 = vector.shape_cast %52 : vector<1x64xf32> to vector<1x1x64xf32>
    tpu.vector_store %arg7[%c0_55, %c0_56, %c0_57], %55 {strides = array<i32>} : memref<1x18x64xf32, #tpu.memory_space<vmem>>, vector<1x1x64xf32>,
    %c0_58 = arith.constant 0 : index
    %c1_59 = arith.constant 1 : index
    %c0_60 = arith.constant 0 : index
    %56 = vector.load %arg7[%c0_58, %c1_59, %c0_60] : memref<1x18x64xf32, #tpu.memory_space<vmem>>, vector<1x16x64xf32>
    %57 = vector.shape_cast %56 : vector<1x16x64xf32> to vector<16x64xf32>
    %58 = vector.shape_cast %40 : vector<16x64xf32> to vector<1x16x64xf32>
    tpu.vector_store %arg7[%c0_58, %c1_59, %c0_60], %58 {strides = array<i32>} : memref<1x18x64xf32, #tpu.memory_space<vmem>>, vector<1x16x64xf32>,
    %c0_61 = arith.constant 0 : index
    %c17 = arith.constant 17 : index
    %c0_62 = arith.constant 0 : index
    %59 = vector.load %arg7[%c0_61, %c17, %c0_62] : memref<1x18x64xf32, #tpu.memory_space<vmem>>, vector<1x1x64xf32>
    %60 = vector.shape_cast %59 : vector<1x1x64xf32> to vector<1x64xf32>
    %61 = vector.shape_cast %52 : vector<1x64xf32> to vector<1x1x64xf32>
    tpu.vector_store %arg7[%c0_61, %c17, %c0_62], %61 {strides = array<i32>} : memref<1x18x64xf32, #tpu.memory_space<vmem>>, vector<1x1x64xf32>,
    return
  }
  func.func @transform_0(%arg0: i32) -> (i32, i32, i32) {
    %c0_i32 = arith.constant 0 : i32
    %c0_i32_0 = arith.constant 0 : i32
    %c0_i32_1 = arith.constant 0 : i32
    return %arg0, %c0_i32, %c0_i32_0 : i32, i32, i32
  }
  func.func @transform_1(%arg0: i32) -> (i32, i32, i32) {
    %c0_i32 = arith.constant 0 : i32
    %c0_i32_0 = arith.constant 0 : i32
    %c0_i32_1 = arith.constant 0 : i32
    return %arg0, %c0_i32, %c0_i32_0 : i32, i32, i32
  }
  func.func @transform_2(%arg0: i32) -> (i32, i32, i32) {
    %c0_i32 = arith.constant 0 : i32
    %c0_i32_0 = arith.constant 0 : i32
    %c0_i32_1 = arith.constant 0 : i32
    %c0_i32_2 = arith.constant 0 : i32
    return %c0_i32, %c0_i32_0, %c0_i32_1 : i32, i32, i32
  }
  func.func @transform_3(%arg0: i32) -> (i32, i32) {
    %c0_i32 = arith.constant 0 : i32
    %c0_i32_0 = arith.constant 0 : i32
    %c0_i32_1 = arith.constant 0 : i32
    return %c0_i32, %c0_i32_0 : i32, i32
  }
  func.func @transform_4(%arg0: i32) -> (i32, i32, i32) {
    %c0_i32 = arith.constant 0 : i32
    %c0_i32_0 = arith.constant 0 : i32
    %c0_i32_1 = arith.constant 0 : i32
    %c0_i32_2 = arith.constant 0 : i32
    return %c0_i32, %c0_i32_0, %c0_i32_1 : i32, i32, i32
  }
  func.func @transform_5(%arg0: i32) -> (i32, i32, i32) {
    %c0_i32 = arith.constant 0 : i32
    %c0_i32_0 = arith.constant 0 : i32
    %c0_i32_1 = arith.constant 0 : i32
    %c0_i32_2 = arith.constant 0 : i32
    return %c0_i32, %c0_i32_0, %c0_i32_1 : i32, i32, i32
  }
  func.func @transform_6(%arg0: i32) -> (i32, i32, i32) {
    %c0_i32 = arith.constant 0 : i32
    %c0_i32_0 = arith.constant 0 : i32
    %c0_i32_1 = arith.constant 0 : i32
    return %arg0, %c0_i32, %c0_i32_0 : i32, i32, i32
  }
  func.func @transform_7(%arg0: i32) -> (i32, i32, i32) {
    %c0_i32 = arith.constant 0 : i32
    %c0_i32_0 = arith.constant 0 : i32
    %c0_i32_1 = arith.constant 0 : i32
    return %arg0, %c0_i32, %c0_i32_0 : i32, i32, i32
  }
  func.func @transform_8(%arg0: i32) -> (i32, i32, i32) {
    %c0_i32 = arith.constant 0 : i32
    %c0_i32_0 = arith.constant 0 : i32
    %c0_i32_1 = arith.constant 0 : i32
    return %arg0, %c0_i32, %c0_i32_0 : i32, i32, i32
  }
}

module attributes {stable_mosaic.version = 11 : i64} {
  func.func @_conv2_kernel(%arg0: i32, %arg1: memref<1x18x64xf32, #tpu.memory_space<vmem>>, %arg2: memref<3x64x64xf32, #tpu.memory_space<vmem>>, %arg3: memref<1x64xf32, #tpu.memory_space<vmem>>, %arg4: memref<1x64xf32, #tpu.memory_space<vmem>>, %arg5: memref<1x16x64xf32, #tpu.memory_space<vmem>>, %arg6: memref<1x1x64xf32, #tpu.memory_space<vmem>>, %arg7: memref<1x1x64xf32, #tpu.memory_space<vmem>>, %arg8: memref<18x64xf32, #tpu.memory_space<vmem>>) attributes {dimension_semantics = [#tpu.dimension_semantics<parallel>], iteration_bounds = array<i64: 2>, scalar_prefetch = 0 : i64, scratch_operands = 1 : i64, tpu.core_type = #tpu.core_type<tc>, window_params = [{transform_indices = @transform_0, window_bounds = array<i64: 1, 18, 64>}, {pipeline_mode = #tpu.pipeline_mode<synchronous>, transform_indices = @transform_1, window_bounds = array<i64: 3, 64, 64>}, {pipeline_mode = #tpu.pipeline_mode<synchronous>, transform_indices = @transform_2, window_bounds = array<i64: 1, 64>}, {pipeline_mode = #tpu.pipeline_mode<synchronous>, transform_indices = @transform_3, window_bounds = array<i64: 1, 64>}, {transform_indices = @transform_4, window_bounds = array<i64: 1, 16, 64>}, {transform_indices = @transform_5, window_bounds = array<i64: 1, 1, 64>}, {transform_indices = @transform_6, window_bounds = array<i64: 1, 1, 64>}]} {
    %cst = arith.constant 0.000000e+00 : f32
    %0 = vector.broadcast %cst : f32 to vector<1x64xf32>
    %c0 = arith.constant 0 : index
    %c0_0 = arith.constant 0 : index
    %1 = vector.load %arg8[%c0, %c0_0] : memref<18x64xf32, #tpu.memory_space<vmem>>, vector<1x64xf32>
    tpu.vector_store %arg8[%c0, %c0_0], %0 {strides = array<i32>} : memref<18x64xf32, #tpu.memory_space<vmem>>, vector<1x64xf32>,
    %c0_1 = arith.constant 0 : index
    %c1 = arith.constant 1 : index
    %c0_2 = arith.constant 0 : index
    %2 = vector.load %arg1[%c0_1, %c1, %c0_2] : memref<1x18x64xf32, #tpu.memory_space<vmem>>, vector<1x16x64xf32>
    %3 = vector.shape_cast %2 : vector<1x16x64xf32> to vector<16x64xf32>
    %c0_3 = arith.constant 0 : index
    %c0_4 = arith.constant 0 : index
    %4 = vector.load %arg3[%c0_3, %c0_4] : memref<1x64xf32, #tpu.memory_space<vmem>>, vector<1x64xf32>
    %5 = vector.broadcast %4 : vector<1x64xf32> to vector<16x64xf32>
    %6 = arith.mulf %3, %5 : vector<16x64xf32>
    %c0_5 = arith.constant 0 : index
    %c0_6 = arith.constant 0 : index
    %7 = vector.load %arg4[%c0_5, %c0_6] : memref<1x64xf32, #tpu.memory_space<vmem>>, vector<1x64xf32>
    %8 = vector.broadcast %7 : vector<1x64xf32> to vector<16x64xf32>
    %9 = arith.addf %6, %8 : vector<16x64xf32>
    %cst_7 = arith.constant 0.000000e+00 : f32
    %10 = vector.broadcast %cst_7 : f32 to vector<16x64xf32>
    %11 = arith.maximumf %9, %10 : vector<16x64xf32>
    %c1_8 = arith.constant 1 : index
    %c0_9 = arith.constant 0 : index
    %12 = vector.load %arg8[%c1_8, %c0_9] : memref<18x64xf32, #tpu.memory_space<vmem>>, vector<16x64xf32>
    tpu.vector_store %arg8[%c1_8, %c0_9], %11 {strides = array<i32>} : memref<18x64xf32, #tpu.memory_space<vmem>>, vector<16x64xf32>,
    %c17 = arith.constant 17 : index
    %c0_10 = arith.constant 0 : index
    %13 = vector.load %arg8[%c17, %c0_10] : memref<18x64xf32, #tpu.memory_space<vmem>>, vector<1x64xf32>
    tpu.vector_store %arg8[%c17, %c0_10], %0 {strides = array<i32>} : memref<18x64xf32, #tpu.memory_space<vmem>>, vector<1x64xf32>,
    %c0_11 = arith.constant 0 : index
    %c0_12 = arith.constant 0 : index
    %14 = vector.load %arg8[%c0_11, %c0_12] : memref<18x64xf32, #tpu.memory_space<vmem>>, vector<16x64xf32>
    %c0_13 = arith.constant 0 : index
    %c0_14 = arith.constant 0 : index
    %c0_15 = arith.constant 0 : index
    %15 = vector.load %arg2[%c0_13, %c0_14, %c0_15] : memref<3x64x64xf32, #tpu.memory_space<vmem>>, vector<1x64x64xf32>
    %16 = vector.shape_cast %15 : vector<1x64x64xf32> to vector<64x64xf32>
    %cst_16 = arith.constant dense<0.000000e+00> : vector<16x64xf32>
    %17 = tpu.matmul %14, %16, %cst_16 {dimension_numbers = #tpu.dot_dimension_numbers<[1], [0], [0], [1], [0, 0, 1, 1], [], []>} : vector<16x64xf32>, vector<64x64xf32>, vector<16x64xf32> -> vector<16x64xf32>
    %c1_17 = arith.constant 1 : index
    %c0_18 = arith.constant 0 : index
    %18 = vector.load %arg8[%c1_17, %c0_18] : memref<18x64xf32, #tpu.memory_space<vmem>>, vector<16x64xf32>
    %c1_19 = arith.constant 1 : index
    %c0_20 = arith.constant 0 : index
    %c0_21 = arith.constant 0 : index
    %19 = vector.load %arg2[%c1_19, %c0_20, %c0_21] : memref<3x64x64xf32, #tpu.memory_space<vmem>>, vector<1x64x64xf32>
    %20 = vector.shape_cast %19 : vector<1x64x64xf32> to vector<64x64xf32>
    %cst_22 = arith.constant dense<0.000000e+00> : vector<16x64xf32>
    %21 = tpu.matmul %18, %20, %cst_22 {dimension_numbers = #tpu.dot_dimension_numbers<[1], [0], [0], [1], [0, 0, 1, 1], [], []>} : vector<16x64xf32>, vector<64x64xf32>, vector<16x64xf32> -> vector<16x64xf32>
    %22 = arith.addf %17, %21 : vector<16x64xf32>
    %c2 = arith.constant 2 : index
    %c0_23 = arith.constant 0 : index
    %23 = vector.load %arg8[%c2, %c0_23] : memref<18x64xf32, #tpu.memory_space<vmem>>, vector<16x64xf32>
    %c2_24 = arith.constant 2 : index
    %c0_25 = arith.constant 0 : index
    %c0_26 = arith.constant 0 : index
    %24 = vector.load %arg2[%c2_24, %c0_25, %c0_26] : memref<3x64x64xf32, #tpu.memory_space<vmem>>, vector<1x64x64xf32>
    %25 = vector.shape_cast %24 : vector<1x64x64xf32> to vector<64x64xf32>
    %cst_27 = arith.constant dense<0.000000e+00> : vector<16x64xf32>
    %26 = tpu.matmul %23, %25, %cst_27 {dimension_numbers = #tpu.dot_dimension_numbers<[1], [0], [0], [1], [0, 0, 1, 1], [], []>} : vector<16x64xf32>, vector<64x64xf32>, vector<16x64xf32> -> vector<16x64xf32>
    %27 = arith.addf %22, %26 : vector<16x64xf32>
    %cst_28 = arith.constant dense<0.000000e+00> : vector<64xf32>
    %28 = vector.multi_reduction <add>, %27, %cst_28 [0] : vector<16x64xf32> to vector<64xf32>
    %29 = vector.shape_cast %28 : vector<64xf32> to vector<1x64xf32>
    %c0_29 = arith.constant 0 : index
    %c0_30 = arith.constant 0 : index
    %c0_31 = arith.constant 0 : index
    %30 = vector.load %arg6[%c0_29, %c0_30, %c0_31] : memref<1x1x64xf32, #tpu.memory_space<vmem>>, vector<1x1x64xf32>
    %31 = vector.shape_cast %30 : vector<1x1x64xf32> to vector<1x64xf32>
    %32 = vector.shape_cast %29 : vector<1x64xf32> to vector<1x1x64xf32>
    tpu.vector_store %arg6[%c0_29, %c0_30, %c0_31], %32 {strides = array<i32>} : memref<1x1x64xf32, #tpu.memory_space<vmem>>, vector<1x1x64xf32>,
    %33 = arith.mulf %27, %27 : vector<16x64xf32>
    %cst_32 = arith.constant dense<0.000000e+00> : vector<64xf32>
    %34 = vector.multi_reduction <add>, %33, %cst_32 [0] : vector<16x64xf32> to vector<64xf32>
    %35 = vector.shape_cast %34 : vector<64xf32> to vector<1x64xf32>
    %c0_33 = arith.constant 0 : index
    %c0_34 = arith.constant 0 : index
    %c0_35 = arith.constant 0 : index
    %36 = vector.load %arg7[%c0_33, %c0_34, %c0_35] : memref<1x1x64xf32, #tpu.memory_space<vmem>>, vector<1x1x64xf32>
    %37 = vector.shape_cast %36 : vector<1x1x64xf32> to vector<1x64xf32>
    %38 = vector.shape_cast %35 : vector<1x64xf32> to vector<1x1x64xf32>
    tpu.vector_store %arg7[%c0_33, %c0_34, %c0_35], %38 {strides = array<i32>} : memref<1x1x64xf32, #tpu.memory_space<vmem>>, vector<1x1x64xf32>,
    %c0_36 = arith.constant 0 : index
    %c0_37 = arith.constant 0 : index
    %c0_38 = arith.constant 0 : index
    %39 = vector.load %arg5[%c0_36, %c0_37, %c0_38] : memref<1x16x64xf32, #tpu.memory_space<vmem>>, vector<1x16x64xf32>
    %40 = vector.shape_cast %39 : vector<1x16x64xf32> to vector<16x64xf32>
    %41 = vector.shape_cast %27 : vector<16x64xf32> to vector<1x16x64xf32>
    tpu.vector_store %arg5[%c0_36, %c0_37, %c0_38], %41 {strides = array<i32>} : memref<1x16x64xf32, #tpu.memory_space<vmem>>, vector<1x16x64xf32>,
    return
  }
  func.func @transform_0(%arg0: i32) -> (i32, i32, i32) {
    %c0_i32 = arith.constant 0 : i32
    %c0_i32_0 = arith.constant 0 : i32
    %c0_i32_1 = arith.constant 0 : i32
    return %arg0, %c0_i32, %c0_i32_0 : i32, i32, i32
  }
  func.func @transform_1(%arg0: i32) -> (i32, i32, i32) {
    %c0_i32 = arith.constant 0 : i32
    %c0_i32_0 = arith.constant 0 : i32
    %c0_i32_1 = arith.constant 0 : i32
    %c0_i32_2 = arith.constant 0 : i32
    return %c0_i32, %c0_i32_0, %c0_i32_1 : i32, i32, i32
  }
  func.func @transform_2(%arg0: i32) -> (i32, i32) {
    %c0_i32 = arith.constant 0 : i32
    %c0_i32_0 = arith.constant 0 : i32
    %c0_i32_1 = arith.constant 0 : i32
    return %c0_i32, %c0_i32_0 : i32, i32
  }
  func.func @transform_3(%arg0: i32) -> (i32, i32) {
    %c0_i32 = arith.constant 0 : i32
    %c0_i32_0 = arith.constant 0 : i32
    %c0_i32_1 = arith.constant 0 : i32
    return %c0_i32, %c0_i32_0 : i32, i32
  }
  func.func @transform_4(%arg0: i32) -> (i32, i32, i32) {
    %c0_i32 = arith.constant 0 : i32
    %c0_i32_0 = arith.constant 0 : i32
    %c0_i32_1 = arith.constant 0 : i32
    return %arg0, %c0_i32, %c0_i32_0 : i32, i32, i32
  }
  func.func @transform_5(%arg0: i32) -> (i32, i32, i32) {
    %c0_i32 = arith.constant 0 : i32
    %c0_i32_0 = arith.constant 0 : i32
    %c0_i32_1 = arith.constant 0 : i32
    return %arg0, %c0_i32, %c0_i32_0 : i32, i32, i32
  }
  func.func @transform_6(%arg0: i32) -> (i32, i32, i32) {
    %c0_i32 = arith.constant 0 : i32
    %c0_i32_0 = arith.constant 0 : i32
    %c0_i32_1 = arith.constant 0 : i32
    return %arg0, %c0_i32, %c0_i32_0 : i32, i32, i32
  }
}

module attributes {stable_mosaic.version = 11 : i64} {
  func.func @_bn_relu_kernel(%arg0: i32, %arg1: memref<8x128xf32, #tpu.memory_space<vmem>>, %arg2: memref<1x128xf32, #tpu.memory_space<vmem>>, %arg3: memref<1x128xf32, #tpu.memory_space<vmem>>, %arg4: memref<8x128xf32, #tpu.memory_space<vmem>>) attributes {dimension_semantics = [#tpu.dimension_semantics<parallel>], iteration_bounds = array<i64: 2>, scalar_prefetch = 0 : i64, scratch_operands = 0 : i64, tpu.core_type = #tpu.core_type<tc>, window_params = [{transform_indices = @transform_0, window_bounds = array<i64: 8, 128>}, {pipeline_mode = #tpu.pipeline_mode<synchronous>, transform_indices = @transform_1, window_bounds = array<i64: 1, 128>}, {pipeline_mode = #tpu.pipeline_mode<synchronous>, transform_indices = @transform_2, window_bounds = array<i64: 1, 128>}, {transform_indices = @transform_3, window_bounds = array<i64: 8, 128>}]} {
    %c0 = arith.constant 0 : index
    %c0_0 = arith.constant 0 : index
    %0 = vector.load %arg1[%c0, %c0_0] : memref<8x128xf32, #tpu.memory_space<vmem>>, vector<8x128xf32>
    %c0_1 = arith.constant 0 : index
    %c0_2 = arith.constant 0 : index
    %1 = vector.load %arg2[%c0_1, %c0_2] : memref<1x128xf32, #tpu.memory_space<vmem>>, vector<1x128xf32>
    %2 = vector.broadcast %1 : vector<1x128xf32> to vector<8x128xf32>
    %3 = arith.mulf %0, %2 : vector<8x128xf32>
    %c0_3 = arith.constant 0 : index
    %c0_4 = arith.constant 0 : index
    %4 = vector.load %arg3[%c0_3, %c0_4] : memref<1x128xf32, #tpu.memory_space<vmem>>, vector<1x128xf32>
    %5 = vector.broadcast %4 : vector<1x128xf32> to vector<8x128xf32>
    %6 = arith.addf %3, %5 : vector<8x128xf32>
    %cst = arith.constant 0.000000e+00 : f32
    %7 = vector.broadcast %cst : f32 to vector<8x128xf32>
    %8 = arith.maximumf %6, %7 : vector<8x128xf32>
    %c0_5 = arith.constant 0 : index
    %c0_6 = arith.constant 0 : index
    %9 = vector.load %arg4[%c0_5, %c0_6] : memref<8x128xf32, #tpu.memory_space<vmem>>, vector<8x128xf32>
    tpu.vector_store %arg4[%c0_5, %c0_6], %8 {strides = array<i32>} : memref<8x128xf32, #tpu.memory_space<vmem>>, vector<8x128xf32>,
    return
  }
  func.func @transform_0(%arg0: i32) -> (i32, i32) {
    %c0_i32 = arith.constant 0 : i32
    %c0_i32_0 = arith.constant 0 : i32
    return %arg0, %c0_i32 : i32, i32
  }
  func.func @transform_1(%arg0: i32) -> (i32, i32) {
    %c0_i32 = arith.constant 0 : i32
    %c0_i32_0 = arith.constant 0 : i32
    %c0_i32_1 = arith.constant 0 : i32
    return %c0_i32, %c0_i32_0 : i32, i32
  }
  func.func @transform_2(%arg0: i32) -> (i32, i32) {
    %c0_i32 = arith.constant 0 : i32
    %c0_i32_0 = arith.constant 0 : i32
    %c0_i32_1 = arith.constant 0 : i32
    return %c0_i32, %c0_i32_0 : i32, i32
  }
  func.func @transform_3(%arg0: i32) -> (i32, i32) {
    %c0_i32 = arith.constant 0 : i32
    %c0_i32_0 = arith.constant 0 : i32
    return %arg0, %c0_i32 : i32, i32
  }
}

</mosaic_0001>

<bundles_post_ra>
// kernel: tile.28
= control target key start
LH: loop header
LB: loop body
LE: loop exit
PB: predicated region body
PF: predicated region fallthrough
CT: control target
= control target key end

     0   :  { %s28_s0 = inlined_call_operand.vmem [shape: f32[4], index: 0, kind: input, shape index: {}]   ;;  %s29_s1 = inlined_call_operand.vmem [shape: f32[16,4], index: 1, kind: output, shape index: {}]  }
   0x1   :  { %v4_v0 = vld [vmem:[%s28_s0] ss:$0 sm:$0xff] }
   0x2   :  { %5 = vst [vmem:[%s29_s1] sm:$0xff] %v4_v0 }
   0x3   :  { %8 = vst [vmem:[%s29_s1 + $0x8] sm:$0xff] %v4_v0 }

// kernel: tile.29
= control target key start
LH: loop header
LB: loop body
LE: loop exit
PB: predicated region body
PF: predicated region fallthrough
CT: control target
= control target key end

     0   :  { %s131_s10 = smov 60   ;;  %s132_s11 = smov 52   ;;  %vm3_vm0 = vcmask 31744   ;;  %vm9_vm1 = vcmask 523744   ;;  %vm15_vm2 = vcmask 490944   ;;  %vm21_vm3 = vcmask 458144   ;;  %s207_s0 = inlined_call_operand.vmem [shape: f32[16,4], index: 0, kind: input, shape index: {}]   ;;  %s208_s1 = inlined_call_operand.vmem [shape: f32[1,64], index: 1, kind: output, shape index: {}]  }
   0x1   :  { %v101_v0 = vld [vmem:[%s207_s0 + $0xf] sm:$0x1]   ;;  %v103_v1 = vld [vmem:[%s207_s0 + $0xd] sm:$0x1]   ;;  %v105_v2 = vld [vmem:[%s207_s0 + $0xb] sm:$0x1]  }
   0x2   :  { %7 = vrot.lane.b32.xlu0 %v101_v0, %s131_s10  ;;  %19 = vrot.lane.b32.xlu1 %v103_v1, %s132_s11  ;;  %s133_s14 = smov 44   ;;  %v102_v3 = vld [vmem:[%s207_s0 + $0xe] sm:$0x1]   ;;  %v104_v4 = vld [vmem:[%s207_s0 + $0xc] sm:$0x1]   ;;  %s134_s19 = smov 56  }
   0x3   :  { %31 = vrot.lane.b32.xlu2 %v105_v2, %s133_s14  ;;  %s135_s20 = smov 48   ;;  %v106_v5 = vld [vmem:[%s207_s0 + $0xa] sm:$0x1]   ;;  %s136_s23 = smov 40   ;;  %v107_v6 = vld [vmem:[%s207_s0 + $0x9] sm:$0x1]  }
   0x4   :  { %v108_v7 = vld [vmem:[%s207_s0 + $0x8] sm:$0x1]   ;;  %s137_s28 = smov 36   ;;  %s138_s29 = smov 32   ;;  %v109_v8 = vld [vmem:[%s207_s0 + $0x7] sm:$0x1]  }
   0x5   :  { %s139_s3 = smov 28   ;;  %v110_v9 = vld [vmem:[%s207_s0 + $0x6] sm:$0x1]   ;;  %v111_v10 = vld [vmem:[%s207_s0 + $0x5] sm:$0x1]   ;;  %s140_s8 = smov 24  }
   0x6   :  { %s141_s9 = smov 20   ;;  %v112_v11 = vld [vmem:[%s207_s0 + $0x4] sm:$0x1]   ;;  %s142_s12 = smov 16   ;;  %v113_v12 = vld [vmem:[%s207_s0 + $0x3] sm:$0x1]  }
   0x7   :  { %v114_v13 = vld [vmem:[%s207_s0 + $0x2] sm:$0x1]   ;;  %s143_s17 = smov 12   ;;  %s144_s18 = smov 8   ;;  %v115_v14 = vld [vmem:[%s207_s0 + $0x1] sm:$0x1]  }
   0x8   :  { %s145_s21 = smov 4   ;;  %v2_v15 = vld [vmem:[%s207_s0] sm:$0x1]   ;;  %vm27_vm4 = vcmask 425344   ;;  %vm33_vm5 = vcmask 392544   ;;  %vm39_vm6 = vcmask 359744  }
   0x9   :  { %4 = vst.msk [vmem:[#allocation0] sm:$0x1] %vm3_vm0, %v2_v15   ;;  %vm45_vm7 = vcmask 326944   ;;  %vm51_vm8 = vcmask 294144   ;;  %vm57_vm9 = vcmask 261344   ;;  %vm63_vm10 = vcmask 228544  }
   0xa   :  { %13 = vrot.lane.b32.xlu0 %v102_v3, %s134_s19  ;;  %25 = vrot.lane.b32.xlu1 %v104_v4, %s135_s20  ;;  %vm69_vm11 = vcmask 195744   ;;  %vm75_vm12 = vcmask 162944   ;;  %vm81_vm13 = vcmask 130144   ;;  %vm87_vm14 = vcmask 97344  }
   0xb   :  { %37 = vrot.lane.b32.xlu2 %v106_v5, %s136_s23  ;;  %vm93_vm15 = vcmask 64544  }
  0x12   :  { %43 = vrot.lane.b32.xlu0 %v107_v6, %s137_s28  ;;  %49 = vrot.lane.b32.xlu1 %v108_v7, %s138_s29 }
  0x13   :  { %55 = vrot.lane.b32.xlu2 %v109_v8, %s139_s3 }
  0x1a   :  { %61 = vrot.lane.b32.xlu0 %v110_v9, %s140_s8  ;;  %67 = vrot.lane.b32.xlu1 %v111_v10, %s141_s9 }
  0x1b   :  { %73 = vrot.lane.b32.xlu2 %v112_v11, %s142_s12 }
  0x22   :  { %79 = vrot.lane.b32.xlu0 %v113_v12, %s143_s17  ;;  %85 = vrot.lane.b32.xlu1 %v114_v13, %s144_s18 }
  0x23   :  { %91 = vrot.lane.b32.xlu2 %v115_v14, %s145_s21 }
  0x5d   :  { %v32_v16 = vpop.permute.xlu2 %31  }
  0x65   :  { %v38_v17 = vpop.permute.xlu2 %37  }
  0x6d   :  { %v56_v18 = vpop.permute.xlu2 %55  }
  0x74   :  { %v8_v19 = vpop.permute.xlu0 %7   ;;  %v20_v20 = vpop.permute.xlu1 %19  }
  0x75   :  { %10 = vst.msk [vmem:[#allocation0] sm:$0x1] %vm9_vm1, %v8_v19   ;;  %v74_v21 = vpop.permute.xlu2 %73  }
  0x7c   :  { %v14_v22 = vpop.permute.xlu0 %13   ;;  %v26_v23 = vpop.permute.xlu1 %25  }
  0x7d   :  { %16 = vst.msk [vmem:[#allocation0] sm:$0x1] %vm15_vm2, %v14_v22   ;;  %v92_v24 = vpop.permute.xlu2 %91  }
  0x7e   :  { %22 = vst.msk [vmem:[#allocation0] sm:$0x1] %vm21_vm3, %v20_v20  }
  0x7f   :  { %28 = vst.msk [vmem:[#allocation0] sm:$0x1] %vm27_vm4, %v26_v23  }
  0x80   :  { %34 = vst.msk [vmem:[#allocation0] sm:$0x1] %vm33_vm5, %v32_v16  }
  0x81   :  { %40 = vst.msk [vmem:[#allocation0] sm:$0x1] %vm39_vm6, %v38_v17  }
  0x84   :  { %v44_v25 = vpop.permute.xlu0 %43   ;;  %v50_v26 = vpop.permute.xlu1 %49  }
  0x85   :  { %46 = vst.msk [vmem:[#allocation0] sm:$0x1] %vm45_vm7, %v44_v25  }
  0x86   :  { %52 = vst.msk [vmem:[#allocation0] sm:$0x1] %vm51_vm8, %v50_v26  }
  0x87   :  { %58 = vst.msk [vmem:[#allocation0] sm:$0x1] %vm57_vm9, %v56_v18  }
  0x8c   :  { %v62_v27 = vpop.permute.xlu0 %61   ;;  %v68_v28 = vpop.permute.xlu1 %67  }
  0x8d   :  { %64 = vst.msk [vmem:[#allocation0] sm:$0x1] %vm63_vm10, %v62_v27  }
  0x8e   :  { %70 = vst.msk [vmem:[#allocation0] sm:$0x1] %vm69_vm11, %v68_v28  }
  0x8f   :  { %76 = vst.msk [vmem:[#allocation0] sm:$0x1] %vm75_vm12, %v74_v21  }
  0x94   :  { %v80_v29 = vpop.permute.xlu0 %79   ;;  %v86_v30 = vpop.permute.xlu1 %85  }
  0x95   :  { %82 = vst.msk [vmem:[#allocation0] sm:$0x1] %vm81_vm13, %v80_v29  }
  0x96   :  { %88 = vst.msk [vmem:[#allocation0] sm:$0x1] %vm87_vm14, %v86_v30  }
  0x97   :  { %94 = vst.msk [vmem:[#allocation0] sm:$0x1] %vm93_vm15, %v92_v24  }
  0x9e   :  { %v97_v31 = vld [vmem:[#allocation0] sm:$0x1] }
  0x9f   :  { %100 = vst [vmem:[%s208_s1] sm:$0x1] %v97_v31 }

// kernel: tile.43
= control target key start
LH: loop header
LB: loop body
LE: loop exit
PB: predicated region body
PF: predicated region fallthrough
CT: control target
= control target key end

     0   :  { %s40_s0 = inlined_call_operand.vmem [shape: f32[4], index: 0, kind: input, shape index: {}]   ;;  %s41_s1 = inlined_call_operand.vmem [shape: f32[32,4], index: 1, kind: output, shape index: {}]  }
   0x1   :  { %v4_v0 = vld [vmem:[%s40_s0] ss:$0 sm:$0xff] }
   0x2   :  { %5 = vst [vmem:[%s41_s1] sm:$0xff] %v4_v0 }
   0x3   :  { %12 = vst [vmem:[%s41_s1 + $0x8] sm:$0xff] %v4_v0 }
   0x4   :  { %13 = vst [vmem:[%s41_s1 + $0x10] sm:$0xff] %v4_v0 }
   0x5   :  { %14 = vst [vmem:[%s41_s1 + $0x18] sm:$0xff] %v4_v0 }

// kernel: tile.44
= control target key start
LH: loop header
LB: loop body
LE: loop exit
PB: predicated region body
PF: predicated region fallthrough
CT: control target
= control target key end

     0   :  { %s259_s10 = smov 124   ;;  %s260_s11 = smov 116   ;;  %vm3_vm0 = vcmask 31744   ;;  %vm9_vm1 = vcmask 1048544   ;;  %vm15_vm2 = vcmask 1015744   ;;  %vm21_vm3 = vcmask 982944   ;;  %s399_s0 = inlined_call_operand.vmem [shape: f32[32,4], index: 0, kind: input, shape index: {}]   ;;  %s400_s1 = inlined_call_operand.vmem [shape: f32[1,128], index: 1, kind: output, shape index: {}]  }
   0x1   :  { %v197_v0 = vld [vmem:[%s399_s0 + $0x1f] sm:$0x1]   ;;  %v199_v1 = vld [vmem:[%s399_s0 + $0x1d] sm:$0x1]   ;;  %v201_v2 = vld [vmem:[%s399_s0 + $0x1b] sm:$0x1]  }
   0x2   :  { %7 = vrot.lane.b32.xlu0 %v197_v0, %s259_s10  ;;  %19 = vrot.lane.b32.xlu1 %v199_v1, %s260_s11  ;;  %s261_s14 = smov 108   ;;  %v198_v3 = vld [vmem:[%s399_s0 + $0x1e] sm:$0x1]   ;;  %v200_v4 = vld [vmem:[%s399_s0 + $0x1c] sm:$0x1]   ;;  %s262_s19 = smov 120  }
   0x3   :  { %31 = vrot.lane.b32.xlu2 %v201_v2, %s261_s14  ;;  %s263_s20 = smov 112   ;;  %v202_v5 = vld [vmem:[%s399_s0 + $0x1a] sm:$0x1]   ;;  %s264_s23 = smov 104   ;;  %v203_v6 = vld [vmem:[%s399_s0 + $0x19] sm:$0x1]  }
   0x4   :  { %v204_v7 = vld [vmem:[%s399_s0 + $0x18] sm:$0x1]   ;;  %s265_s28 = smov 100   ;;  %s266_s29 = smov 96   ;;  %v205_v8 = vld [vmem:[%s399_s0 + $0x17] sm:$0x1]  }
   0x5   :  { %s267_s3 = smov 92   ;;  %v206_v9 = vld [vmem:[%s399_s0 + $0x16] sm:$0x1]   ;;  %v207_v10 = vld [vmem:[%s399_s0 + $0x15] sm:$0x1]   ;;  %s268_s8 = smov 88  }
   0x6   :  { %s269_s9 = smov 84   ;;  %v208_v11 = vld [vmem:[%s399_s0 + $0x14] sm:$0x1]   ;;  %s270_s12 = smov 80   ;;  %v209_v12 = vld [vmem:[%s399_s0 + $0x13] sm:$0x1]  }
   0x7   :  { %v210_v13 = vld [vmem:[%s399_s0 + $0x12] sm:$0x1]   ;;  %s271_s17 = smov 76   ;;  %s272_s18 = smov 72   ;;  %v211_v14 = vld [vmem:[%s399_s0 + $0x11] sm:$0x1]  }
   0x8   :  { %s273_s21 = smov 68   ;;  %v212_v15 = vld [vmem:[%s399_s0 + $0x10] sm:$0x1]   ;;  %v213_v16 = vld [vmem:[%s399_s0 + $0xf] sm:$0x1]   ;;  %s274_s26 = smov 64  }
   0x9   :  { %s275_s27 = smov 60   ;;  %v214_v17 = vld [vmem:[%s399_s0 + $0xe] sm:$0x1]   ;;  %s276_s30 = smov 56   ;;  %v215_v18 = vld [vmem:[%s399_s0 + $0xd] sm:$0x1]  }
   0xa   :  { %13 = vrot.lane.b32.xlu0 %v198_v3, %s262_s19  ;;  %25 = vrot.lane.b32.xlu1 %v200_v4, %s263_s20  ;;  %v216_v19 = vld [vmem:[%s399_s0 + $0xc] sm:$0x1]   ;;  %s277_s6 = smov 52   ;;  %s278_s7 = smov 48   ;;  %v217_v20 = vld [vmem:[%s399_s0 + $0xb] sm:$0x1]  }
   0xb   :  { %37 = vrot.lane.b32.xlu2 %v202_v5, %s264_s23  ;;  %s279_s10 = smov 44   ;;  %v218_v21 = vld [vmem:[%s399_s0 + $0xa] sm:$0x1]   ;;  %v219_v22 = vld [vmem:[%s399_s0 + $0x9] sm:$0x1]   ;;  %s280_s15 = smov 40  }
   0xc   :  { %s281_s16 = smov 36   ;;  %v220_v23 = vld [vmem:[%s399_s0 + $0x8] sm:$0x1]   ;;  %s282_s19 = smov 32   ;;  %v221_v24 = vld [vmem:[%s399_s0 + $0x7] sm:$0x1]  }
   0xd   :  { %v222_v25 = vld [vmem:[%s399_s0 + $0x6] sm:$0x1]   ;;  %s283_s24 = smov 28   ;;  %s284_s25 = smov 24   ;;  %v223_v26 = vld [vmem:[%s399_s0 + $0x5] sm:$0x1]  }
   0xe   :  { %v224_v27 = vld [vmem:[%s399_s0 + $0x4] sm:$0x1]   ;;  %v225_v28 = vld [vmem:[%s399_s0 + $0x3] sm:$0x1]   ;;  %s286_s4 = smov 16   ;;  %s287_s5 = smov 12  }
   0xf   :  { %v226_v29 = vld [vmem:[%s399_s0 + $0x2] sm:$0x1]   ;;  %v227_v30 = vld [vmem:[%s399_s0 + $0x1] sm:$0x1]   ;;  %s289_s11 = smov 4   ;;  %vm27_vm4 = vcmask 950144  }
  0x10   :  { %v2_v31 = vld [vmem:[%s399_s0] sm:$0x1]   ;;  %vm33_vm5 = vcmask 917344   ;;  %vm39_vm6 = vcmask 884544   ;;  %vm45_vm7 = vcmask 851744   ;;  %vm51_vm8 = vcmask 818944  }
  0x11   :  { %4 = vst.msk [vmem:[#allocation0] sm:$0x1] %vm3_vm0, %v2_v31   ;;  %vm57_vm9 = vcmask 786144   ;;  %vm63_vm10 = vcmask 753344   ;;  %vm69_vm11 = vcmask 720544   ;;  %vm75_vm12 = vcmask 687744  }
  0x12   :  { %43 = vrot.lane.b32.xlu0 %v203_v6, %s265_s28  ;;  %49 = vrot.lane.b32.xlu1 %v204_v7, %s266_s29  ;;  %s285_s28 = smov 20   ;;  %vm81_vm13 = vcmask 654944   ;;  %vm87_vm14 = vcmask 622144   ;;  %vm93_vm15 = vcmask 589344   ;;  %vm99_vm0 = vcmask 556544  }
  0x13   :  { %55 = vrot.lane.b32.xlu2 %v205_v8, %s267_s3 }
  0x1a   :  { %61 = vrot.lane.b32.xlu0 %v206_v9, %s268_s8  ;;  %67 = vrot.lane.b32.xlu1 %v207_v10, %s269_s9  ;;  %s288_s8 = smov 8  }
  0x1b   :  { %73 = vrot.lane.b32.xlu2 %v208_v11, %s270_s12 }
  0x22   :  { %79 = vrot.lane.b32.xlu0 %v209_v12, %s271_s17  ;;  %85 = vrot.lane.b32.xlu1 %v210_v13, %s272_s18 }
  0x23   :  { %91 = vrot.lane.b32.xlu2 %v211_v14, %s273_s21 }
  0x2a   :  { %97 = vrot.lane.b32.xlu0 %v212_v15, %s274_s26  ;;  %103 = vrot.lane.b32.xlu1 %v213_v16, %s275_s27 }
  0x2b   :  { %109 = vrot.lane.b32.xlu2 %v214_v17, %s276_s30 }
  0x32   :  { %115 = vrot.lane.b32.xlu0 %v215_v18, %s277_s6  ;;  %121 = vrot.lane.b32.xlu1 %v216_v19, %s278_s7 }
  0x33   :  { %127 = vrot.lane.b32.xlu2 %v217_v20, %s279_s10 }
  0x3a   :  { %133 = vrot.lane.b32.xlu0 %v218_v21, %s280_s15  ;;  %139 = vrot.lane.b32.xlu1 %v219_v22, %s281_s16 }
  0x3b   :  { %145 = vrot.lane.b32.xlu2 %v220_v23, %s282_s19 }
  0x42   :  { %151 = vrot.lane.b32.xlu0 %v221_v24, %s283_s24  ;;  %157 = vrot.lane.b32.xlu1 %v222_v25, %s284_s25 }
  0x43   :  { %163 = vrot.lane.b32.xlu2 %v223_v26, %s285_s28 }
  0x4a   :  { %169 = vrot.lane.b32.xlu0 %v224_v27, %s286_s4  ;;  %175 = vrot.lane.b32.xlu1 %v225_v28, %s287_s5 }
  0x4b   :  { %181 = vrot.lane.b32.xlu2 %v226_v29, %s288_s8 }
  0x52   :  { %187 = vrot.lane.b32.xlu0 %v227_v30, %s289_s11 }
  0x5d   :  { %v32_v32 = vpop.permute.xlu2 %31  }
  0x65   :  { %v38_v33 = vpop.permute.xlu2 %37  }
  0x6d   :  { %v56_v34 = vpop.permute.xlu2 %55  }
  0x74   :  { %v8_v35 = vpop.permute.xlu0 %7   ;;  %v20_v36 = vpop.permute.xlu1 %19  }
  0x75   :  { %10 = vst.msk [vmem:[#allocation0] sm:$0x1] %vm9_vm1, %v8_v35   ;;  %v74_v37 = vpop.permute.xlu2 %73   ;;  %vm105_vm1 = vcmask 523744  }
  0x7c   :  { %v14_v38 = vpop.permute.xlu0 %13   ;;  %v26_v39 = vpop.permute.xlu1 %25  }
  0x7d   :  { %16 = vst.msk [vmem:[#allocation0] sm:$0x1] %vm15_vm2, %v14_v38   ;;  %v92_v40 = vpop.permute.xlu2 %91   ;;  %vm111_vm2 = vcmask 490944  }
  0x7e   :  { %22 = vst.msk [vmem:[#allocation0] sm:$0x1] %vm21_vm3, %v20_v36   ;;  %vm117_vm3 = vcmask 458144  }
  0x7f   :  { %28 = vst.msk [vmem:[#allocation0] sm:$0x1] %vm27_vm4, %v26_v39   ;;  %vm123_vm4 = vcmask 425344  }
  0x80   :  { %34 = vst.msk [vmem:[#allocation0] sm:$0x1] %vm33_vm5, %v32_v32   ;;  %vm129_vm5 = vcmask 392544  }
  0x81   :  { %40 = vst.msk [vmem:[#allocation0] sm:$0x1] %vm39_vm6, %v38_v33   ;;  %vm135_vm6 = vcmask 359744  }
  0x84   :  { %v44_v41 = vpop.permute.xlu0 %43   ;;  %v50_v42 = vpop.permute.xlu1 %49  }
  0x85   :  { %46 = vst.msk [vmem:[#allocation0] sm:$0x1] %vm45_vm7, %v44_v41   ;;  %v110_v43 = vpop.permute.xlu2 %109   ;;  %vm141_vm7 = vcmask 326944  }
  0x86   :  { %52 = vst.msk [vmem:[#allocation0] sm:$0x1] %vm51_vm8, %v50_v42   ;;  %vm147_vm8 = vcmask 294144  }
  0x87   :  { %58 = vst.msk [vmem:[#allocation0] sm:$0x1] %vm57_vm9, %v56_v34   ;;  %vm153_vm9 = vcmask 261344  }
  0x8c   :  { %v62_v44 = vpop.permute.xlu0 %61   ;;  %v68_v45 = vpop.permute.xlu1 %67  }
  0x8d   :  { %64 = vst.msk [vmem:[#allocation0] sm:$0x1] %vm63_vm10, %v62_v44   ;;  %v128_v46 = vpop.permute.xlu2 %127   ;;  %vm159_vm10 = vcmask 228544  }
  0x8e   :  { %70 = vst.msk [vmem:[#allocation0] sm:$0x1] %vm69_vm11, %v68_v45   ;;  %vm165_vm11 = vcmask 195744  }
  0x8f   :  { %76 = vst.msk [vmem:[#allocation0] sm:$0x1] %vm75_vm12, %v74_v37   ;;  %vm171_vm12 = vcmask 162944  }
  0x94   :  { %v80_v47 = vpop.permute.xlu0 %79   ;;  %v86_v48 = vpop.permute.xlu1 %85  }
  0x95   :  { %82 = vst.msk [vmem:[#allocation0] sm:$0x1] %vm81_vm13, %v80_v47   ;;  %v146_v49 = vpop.permute.xlu2 %145   ;;  %vm177_vm13 = vcmask 130144  }
  0x96   :  { %88 = vst.msk [vmem:[#allocation0] sm:$0x1] %vm87_vm14, %v86_v48   ;;  %vm183_vm14 = vcmask 97344  }
  0x97   :  { %94 = vst.msk [vmem:[#allocation0] sm:$0x1] %vm93_vm15, %v92_v40   ;;  %vm189_vm15 = vcmask 64544  }
  0x9c   :  { %v98_v50 = vpop.permute.xlu0 %97   ;;  %v104_v51 = vpop.permute.xlu1 %103  }
  0x9d   :  { %100 = vst.msk [vmem:[#allocation0] sm:$0x1] %vm99_vm0, %v98_v50   ;;  %v164_v52 = vpop.permute.xlu2 %163  }
  0x9e   :  { %106 = vst.msk [vmem:[#allocation0] sm:$0x1] %vm105_vm1, %v104_v51  }
  0x9f   :  { %112 = vst.msk [vmem:[#allocation0] sm:$0x1] %vm111_vm2, %v110_v43  }
  0xa4   :  { %v116_v53 = vpop.permute.xlu0 %115   ;;  %v122_v54 = vpop.permute.xlu1 %121  }
  0xa5   :  { %118 = vst.msk [vmem:[#allocation0] sm:$0x1] %vm117_vm3, %v116_v53   ;;  %v182_v55 = vpop.permute.xlu2 %181  }
  0xa6   :  { %124 = vst.msk [vmem:[#allocation0] sm:$0x1] %vm123_vm4, %v122_v54  }
  0xa7   :  { %130 = vst.msk [vmem:[#allocation0] sm:$0x1] %vm129_vm5, %v128_v46  }
  0xac   :  { %v134_v56 = vpop.permute.xlu0 %133   ;;  %v140_v57 = vpop.permute.xlu1 %139  }
  0xad   :  { %136 = vst.msk [vmem:[#allocation0] sm:$0x1] %vm135_vm6, %v134_v56  }
  0xae   :  { %142 = vst.msk [vmem:[#allocation0] sm:$0x1] %vm141_vm7, %v140_v57  }
  0xaf   :  { %148 = vst.msk [vmem:[#allocation0] sm:$0x1] %vm147_vm8, %v146_v49  }
  0xb4   :  { %v152_v58 = vpop.permute.xlu0 %151   ;;  %v158_v59 = vpop.permute.xlu1 %157  }
  0xb5   :  { %154 = vst.msk [vmem:[#allocation0] sm:$0x1] %vm153_vm9, %v152_v58  }
  0xb6   :  { %160 = vst.msk [vmem:[#allocation0] sm:$0x1] %vm159_vm10, %v158_v59  }
  0xb7   :  { %166 = vst.msk [vmem:[#allocation0] sm:$0x1] %vm165_vm11, %v164_v52  }
  0xbc   :  { %v170_v60 = vpop.permute.xlu0 %169   ;;  %v176_v61 = vpop.permute.xlu1 %175  }
  0xbd   :  { %172 = vst.msk [vmem:[#allocation0] sm:$0x1] %vm171_vm12, %v170_v60  }
  0xbe   :  { %178 = vst.msk [vmem:[#allocation0] sm:$0x1] %vm177_vm13, %v176_v61  }
  0xbf   :  { %184 = vst.msk [vmem:[#allocation0] sm:$0x1] %vm183_vm14, %v182_v55  }
  0xc4   :  { %v188_v62 = vpop.permute.xlu0 %187  }
  0xc5   :  { %190 = vst.msk [vmem:[#allocation0] sm:$0x1] %vm189_vm15, %v188_v62  }
  0xcc   :  { %v193_v63 = vld [vmem:[#allocation0] sm:$0x1] }
  0xcd   :  { %196 = vst [vmem:[%s400_s1] sm:$0x1] %v193_v63 }

// kernel: upscaling_forward.4
= control target key start
LH: loop header
LB: loop body
LE: loop exit
PB: predicated region body
PF: predicated region fallthrough
CT: control target
= control target key end

     0   :  { %s638_s21 = smov 0   ;;  %s763_s0 = inlined_call_operand.vmem [shape: f32[2,18,64], index: 0, kind: input, shape index: {}]   ;;  %s764_s1 = inlined_call_operand.vmem [shape: f32[3,64,64], index: 1, kind: input, shape index: {}]   ;;  %s765_s2 = inlined_call_operand.vmem [shape: f32[1,64], index: 2, kind: input, shape index: {}]   ;;  %s766_s3 = inlined_call_operand.vmem [shape: f32[1,64], index: 3, kind: input, shape index: {}]   ;;  %s767_s4 = inlined_call_operand.vmem [shape: f32[2,16,64], index: 4, kind: output, shape index: {0}]   ;;  %s768_s5 = inlined_call_operand.vmem [shape: f32[2,1,64], index: 5, kind: output, shape index: {1}]   ;;  %s769_s6 = inlined_call_operand.vmem [shape: f32[2,1,64], index: 6, kind: output, shape index: {2}]  }
   0x1 LB: > { %s541_s22 = sadd.s32 4294967295, %s600_s21   ;;  %p545_p0 = scmp.ge.s32.totalorder %s600_s21, 1  ;;  %s600_s21 = sphi %s638_s21, %s17_s21  }
   0x2   : > { %p217_p1 = scmp.lt.s32.totalorder %s600_s21, 3 }
   0x4   : > { %p218_p2 = pnand %p545_p0, %p217_p1 }
   0x5   : > { %p253_p3 = scmp.lt.s32.totalorder (!%p218_p2), %s541_s22, 1 }
   0x6   : > { %221 = sbr.rel (%p218_p2) target bundleno = 194 (0xc2), region = 36 }
   0xb   : > { %v568_v0 = vld [vmem:[%s764_s1 + $0xb8] sm:$0xff]  ;;  %v567_v1 = vld [vmem:[%s764_s1 + $0xb0] sm:$0xff]  ;;  %vm269_vm0 = vcmask 516096   ;;  %v566_v5 = vld [vmem:[%s764_s1 + $0xa8] sm:$0xff]  ;;  %s771_s22 = smov (!%p253_p3, %s541_s22), 1  ;;  %v602_v8 = vmov 0.0  }
   0xc   : > { %v556_v2 = vld [vmem:[%s764_s1 + $0x78] sm:$0xff]  ;;  %395 = vmatpush.msra.mxu2 %v568_v0  ;;  %v555_v4 = vld [vmem:[%s764_s1 + $0x70] sm:$0xff]  ;;  %v554_v7 = vld [vmem:[%s764_s1 + $0x68] sm:$0xff]  ;;  %270 = vst.msk [vmem:[#allocation2] sm:$0x1] %vm269_vm0, %v602_v8  ;;  %s582_s23 = smul.u32 24, %s771_s22  ;;  %s265_s17 = scalar_lea.vmem %s768_s5, %s771_s22 }
   0xd   : > { %326 = vmatpush.msra.mxu0 %v556_v2  ;;  %v300_v3 = vld [vmem:[%s764_s1 + $0x38] sm:$0xff]  ;;  %574 = vmatpush.msra.mxu3 %v556_v2  ;;  %v299_v6 = vld [vmem:[%s764_s1 + $0x30] sm:$0xff]  ;;  %v298_v9 = vld [vmem:[%s764_s1 + $0x28] sm:$0xff]  ;;  %290 = vst.msk [vmem:[#allocation2 + $0x11] sm:$0x1] %vm269_vm0, %v602_v8  ;;  %vm287_vm1 = vcmask 523264   ;;  %s268_s20 = scalar_lea.vmem %s769_s6, %s771_s22 }
   0xe   : > { %355 = vmatpush.msra.mxu1 %v300_v3  ;;  %396 = vmatpush.msra.mxu2 %v567_v1  ;;  %v565_v10 = vld [vmem:[%s764_s1 + $0xa0] sm:$0xff]  ;;  %v564_v12 = vld [vmem:[%s764_s1 + $0x98] sm:$0xff]  ;;  %v563_v14 = vld [vmem:[%s764_s1 + $0x90] sm:$0xff]  ;;  %s257_s12 = scalar_lea.vmem %s763_s0, %s582_s23  ;;  %s573_s11 = sshll.u32 %s771_s22, 4 }
   0xf   : > { %327 = vmatpush.msra.mxu0 %v555_v4  ;;  %575 = vmatpush.msra.mxu3 %v555_v4  ;;  %v553_v11 = vld [vmem:[%s764_s1 + $0x60] sm:$0xff]  ;;  %v552_v15 = vld [vmem:[%s764_s1 + $0x58] sm:$0xff]  ;;  %v272_v18 = vld [vmem:[%s257_s12 + $0x9] sm:$0xff]  ;;  %s262_s14 = scalar_lea.vmem %s767_s4, %s573_s11 }
  0x10   : > { %356 = vmatpush.msra.mxu1 %v299_v6  ;;  %397 = vmatpush.msra.mxu2 %v566_v5  ;;  %v297_v13 = vld [vmem:[%s764_s1 + $0x20] sm:$0xff]  ;;  %v296_v16 = vld [vmem:[%s764_s1 + $0x18] sm:$0xff]  ;;  %v551_v20 = vld [vmem:[%s764_s1 + $0x50] sm:$0xff] }
  0x11   : > { %328 = vmatpush.msra.mxu0 %v554_v7  ;;  %576 = vmatpush.msra.mxu3 %v554_v7  ;;  %v271_v17 = vld [vmem:[%s257_s12 + $0x1] sm:$0xff]  ;;  %v592_v19 = vld [vmem:[%s765_s2] ss:$0 sm:$0xff]  ;;  %v295_v22 = vld [vmem:[%s764_s1 + $0x10] sm:$0xff] }
  0x12   : > { %357 = vmatpush.msra.mxu1 %v298_v9  ;;  %398 = vmatpush.msra.mxu2 %v565_v10  ;;  %v593_v21 = vld [vmem:[%s766_s3] ss:$0 sm:$0xff]  ;;  %v277_v23 = vmul.f32 %v592_v19, %v271_v17  ;;  %v278_v24 = vmul.f32 %v592_v19, %v272_v18  ;;  %v562_v25 = vld [vmem:[%s764_s1 + $0x88] sm:$0xff] }
  0x13   : > { %329 = vmatpush.msra.mxu0 %v553_v11  ;;  %577 = vmatpush.msra.mxu3 %v553_v11  ;;  %v550_v26 = vld [vmem:[%s764_s1 + $0x48] sm:$0xff]  ;;  %v561_v30 = vld [vmem:[%s764_s1 + $0x80] sm:$0xff] }
  0x14   : > { %358 = vmatpush.msra.mxu1 %v297_v13  ;;  %399 = vmatpush.msra.mxu2 %v564_v12  ;;  %v283_v27 = vadd.f32 %v593_v21, %v277_v23  ;;  %v284_v28 = vadd.f32 %v593_v21, %v278_v24  ;;  %v294_v29 = vld [vmem:[%s764_s1 + $0x8] sm:$0xff]  ;;  %v549_v31 = vld [vmem:[%s764_s1 + $0x40] sm:$0xff] }
  0x15   : > { %330 = vmatpush.msra.mxu0 %v552_v15  ;;  %578 = vmatpush.msra.mxu3 %v552_v15  ;;  %v293_v34 = vld [vmem:[%s764_s1] sm:$0xff] }
  0x16   : > { %359 = vmatpush.msra.mxu1 %v296_v16  ;;  %400 = vmatpush.msra.mxu2 %v563_v14  ;;  %v285_v32 = vmax.f32 %v283_v27, 0.0  ;;  %v286_v33 = vmax.f32 %v284_v28, 0.0 }
  0x17   : > { %331 = vmatpush.msra.mxu0 %v551_v20  ;;  %579 = vmatpush.msra.mxu3 %v551_v20 }
  0x18   : > { %360 = vmatpush.msra.mxu1 %v295_v22  ;;  %401 = vmatpush.msra.mxu2 %v562_v25  ;;  %288 = vst.msk [vmem:[#allocation2 + $0x1] sm:$0xff] %vm287_vm1, %v285_v32 }
  0x19   : > { %332 = vmatpush.msra.mxu0 %v550_v26  ;;  %580 = vmatpush.msra.mxu3 %v550_v26  ;;  %289 = vst.msk [vmem:[#allocation2 + $0x9] sm:$0xff] %vm287_vm1, %v286_v33 }
  0x1a   : > { %361 = vmatpush.msra.mxu1 %v294_v29  ;;  %402 = vmatpush.msra.mxu2 %v561_v30 }
  0x1b   : > { %333 = vmatpush.msra.mxu0 %v549_v31  ;;  %581 = vmatpush.msra.mxu3 %v549_v31 }
  0x1c   : > { %362 = vmatpush.msra.mxu1 %v293_v34 }
  0x1f   : > { %v301_v35 = vld [vmem:[#allocation2 + $0x1] sm:$0xff] }
  0x20   : > { %v291_v36 = vld [vmem:[#allocation2] sm:$0xff]  ;;  %557 = vmatmul.msk.f32.vlgmr.msra.gmra.mxu0 %vm287_vm1, %v301_v35  ;;  %v302_v38 = vld [vmem:[#allocation2 + $0x9] sm:$0xff] }
  0x21   : > { %v370_v37 = vld [vmem:[#allocation2 + $0x2] sm:$0xff]  ;;  %559 = vmatmul.msk.f32.vlgmr.msra.gmra.mxu1 %vm287_vm1, %v291_v36  ;;  %558 = vmatmul.msk.f32.vlgmr.msra.gmra.mxu3 %vm287_vm1, %v302_v38  ;;  %v371_v40 = vld [vmem:[#allocation2 + $0xa] sm:$0xff] }
  0x22   : > { %569 = vmatmul.msk.f32.vlgmr.msra.gmra.mxu2 %vm287_vm1, %v370_v37  ;;  %v292_v39 = vld [vmem:[#allocation2 + $0x8] sm:$0xff] }
  0x29   : > { %560 = vmatmul.msk.f32.gmra.mxu1 %vm287_vm1, %v292_v39 }
  0x2a   : > { %570 = vmatmul.msk.f32.gmra.mxu2 %vm287_vm1, %v371_v40 }
  0x9d   : > { %v335_v42 = vpop.f32.mrf.mxu0 }
  0x9e   : > { %v364_v41 = vpop.f32.mrf.mxu1 }
  0x9f   : > { %v365_v43 = vadd.f32 %v364_v41, %v335_v42 }
  0xa4   : > { %v338_v46 = vpop.f32.mrf.mxu3 }
  0xa5   : > { %v404_v44 = vpop.f32.mrf.mxu2 }
  0xa6   : > { %v410_v45 = vadd.f32 %v404_v44, %v365_v43  ;;  %v367_v47 = vpop.f32.mrf.mxu1 }
  0xa7   : > { %v368_v48 = vadd.f32 %v367_v47, %v338_v46 }
  0xa8   : > { %434 = vst.msk [vmem:[%s262_s14] sm:$0xff] %vm287_vm1, %v410_v45  ;;  %v422_v50 = vmul.f32 %v410_v45, %v410_v45  ;;  %v412_v52 = vsel %vm287_vm1, %v410_v45, 0.0 }
  0xaa   : > { %v424_v56 = vsel %vm287_vm1, %v422_v50, 0.0 }
  0xad   : > { %v407_v49 = vpop.f32.mrf.mxu2 }
  0xae   : > { %v411_v51 = vadd.f32 %v407_v49, %v368_v48 }
  0xb0   : > { %v413_v53 = vsel %vm287_vm1, %v411_v51, 0.0  ;;  %v423_v54 = vmul.f32 %v411_v51, %v411_v51  ;;  %435 = vst.msk [vmem:[%s262_s14 + $0x8] sm:$0xff] %vm287_vm1, %v411_v51 }
  0xb1   : > { %v414_v55 = vadd.f32 %v413_v53, %v412_v52 }
  0xb2   : > { %v425_v57 = vsel %vm287_vm1, %v423_v54, 0.0 }
  0xb3   : > { %v415_v58 = vrot.slane %v414_v55, 4  ;;  %v426_v59 = vadd.f32 %v425_v57, %v424_v56 }
  0xb5   : > { %v416_v60 = vadd.f32 %v415_v58, %v414_v55  ;;  %v427_v61 = vrot.slane %v426_v59, 4 }
  0xb7   : > { %v417_v62 = vrot.slane %v416_v60, 2  ;;  %v428_v63 = vadd.f32 %v427_v61, %v426_v59 }
  0xb9   : > { %v418_v0 = vadd.f32 %v417_v62, %v416_v60  ;;  %v429_v1 = vrot.slane %v428_v63, 2 }
  0xbb   : > { %v419_v2 = vrot.slane %v418_v0, 1  ;;  %v430_v3 = vadd.f32 %v429_v1, %v428_v63 }
  0xbd   : > { %v420_v4 = vadd.f32 %v419_v2, %v418_v0  ;;  %v431_v5 = vrot.slane %v430_v3, 1 }
  0xbf   : > { %421 = vst.msk [vmem:[%s265_s17] sm:$0x1] %vm269_vm0, %v420_v4  ;;  %v432_v6 = vadd.f32 %v431_v5, %v430_v3 }
  0xc1   : > { %433 = vst.msk [vmem:[%s268_s20] sm:$0x1] %vm269_vm0, %v432_v6 }
  0xc2 PF: > { %s17_s21 = sadd.s32 1, %s600_s21  }
  0xc3   : > { %p14_p4 = scmp.ge.s32.totalorder %s17_s21, 4  }
  0xc5   :  { %16 = sbr.rel (!%p14_p4) target bundleno = 1 (0x1), region = 92 }

// kernel: upscaling_forward.3
= control target key start
LH: loop header
LB: loop body
LE: loop exit
PB: predicated region body
PF: predicated region fallthrough
CT: control target
= control target key end

     0   :  { %s886_s27 = smov 0   ;;  %s1149_s0 = inlined_call_operand.vmem [shape: f32[2,8,64], index: 0, kind: input, shape index: {}]   ;;  %s1150_s1 = inlined_call_operand.vmem [shape: f32[2,16,64], index: 1, kind: input, shape index: {}]   ;;  %s1151_s2 = inlined_call_operand.vmem [shape: f32[2,64,64], index: 2, kind: input, shape index: {}]   ;;  %s1152_s3 = inlined_call_operand.vmem [shape: f32[1,64], index: 3, kind: input, shape index: {}]   ;;  %s1153_s4 = inlined_call_operand.vmem [shape: f32[2,16,8], index: 4, kind: input, shape index: {}]   ;;  %s1154_s5 = inlined_call_operand.vmem [shape: f32[3,128,64], index: 5, kind: input, shape index: {}]   ;;  %s1155_s6 = inlined_call_operand.vmem [shape: f32[2,18,64], index: 6, kind: output, shape index: {0}]   ;;  %s1156_s7 = inlined_call_operand.vmem [shape: f32[2,1,64], index: 7, kind: output, shape index: {1}]   ;;  %s1157_s8 = inlined_call_operand.vmem [shape: f32[2,1,64], index: 8, kind: output, shape index: {2}]  }
   0x1 LB: > { %s759_s28 = sadd.s32 4294967295, %s837_s27   ;;  %p763_p0 = scmp.ge.s32.totalorder %s837_s27, 1  ;;  %s837_s27 = sphi %s886_s27, %s19_s27  }
   0x2   : > { %p276_p1 = scmp.lt.s32.totalorder %s837_s27, 3 }
   0x4   : > { %p277_p2 = pnand %p763_p0, %p276_p1 }
   0x5   : > { %p320_p3 = scmp.lt.s32.totalorder (!%p277_p2), %s759_s28, 1  ;;  %s840_s22 = smov (!%p277_p2), 64  }
   0x6   : > { %280 = sbr.rel (%p277_p2) target bundleno = 593 (0x251), region = 44 }
   0xb   : > { %v356_v0 = vld [vmem:[%s1151_s2 + $0x38] sm:$0xff]  ;;  %v355_v1 = vld [vmem:[%s1151_s2 + $0x30] sm:$0xff]  ;;  %v354_v2 = vld [vmem:[%s1151_s2 + $0x28] sm:$0xff]  ;;  %s1159_s28 = smov (!%p320_p3, %s759_s28), 1  ;;  %vm345_vm0 = vcmask 523264   ;;  %vm418_vm1 = vcmask 64512  }
   0xc   : > { %372 = vmatpush.msra.mxu1 %v356_v0  ;;  %v353_v3 = vld [vmem:[%s1151_s2 + $0x20] sm:$0xff]  ;;  %v352_v4 = vld [vmem:[%s1151_s2 + $0x18] sm:$0xff]  ;;  %v351_v5 = vld [vmem:[%s1151_s2 + $0x10] sm:$0xff]  ;;  %s764_s19 = sshll.u32 %s1159_s28, 3  ;;  %v839_v30 = vmov 0.0   ;;  %s818_s13 = sshll.u32 %s1159_s28, 4 }
   0xd   : > { %v350_v6 = vld [vmem:[%s1151_s2 + $0x8] sm:$0xff]  ;;  %s323_s24 = scalar_lea.vmem %s1149_s0, %s764_s19  ;;  %v349_v7 = vld [vmem:[%s1151_s2] sm:$0xff]  ;;  %v776_v8 = vld [vmem:[%s1151_s2 + $0x78] sm:$0xff]  ;;  %340 = vst [vmem:[#allocation2] sm:$0xff] %v839_v30  ;;  %vm485_vm2 = vcmask 1048064   ;;  %s819_s16 = smul.u32 24, %s1159_s28 }
   0xe   : > { %373 = vmatpush.msra.mxu1 %v355_v1  ;;  %v348_v9 = vld [vmem:[%s323_s24] sm:$0xff]  ;;  %v775_v10 = vld [vmem:[%s1151_s2 + $0x70] sm:$0xff]  ;;  %v774_v11 = vld [vmem:[%s1151_s2 + $0x68] sm:$0xff]  ;;  %341 = vst [vmem:[#allocation2 + $0x8] sm:$0xff] %v839_v30  ;;  %s1014_s24 = scalar_lea.vmem %s1150_s1, %s818_s13  ;;  %vm624_vm3 = vcmask 516096   ;;  %s339_s26 = scalar_lea.vmem %s1157_s8, %s1159_s28 }
   0xf   : > { %v773_v12 = vld [vmem:[%s1151_s2 + $0x60] sm:$0xff]  ;;  %v772_v13 = vld [vmem:[%s1151_s2 + $0x58] sm:$0xff]  ;;  %v771_v14 = vld [vmem:[%s1151_s2 + $0x50] sm:$0xff]  ;;  %342 = vst [vmem:[#allocation2 + $0x10] sm:$0x3] %v839_v30  ;;  %s333_s19 = scalar_lea.vmem %s1155_s6, %s819_s16 }
  0x10   : > { %374 = vmatpush.msra.mxu1 %v354_v2  ;;  %v770_v15 = vld [vmem:[%s1151_s2 + $0x48] sm:$0xff]  ;;  %v769_v16 = vld [vmem:[%s1151_s2 + $0x40] sm:$0xff]  ;;  %v778_v24 = vld [vmem:[%s1153_s4 + $0x10] sm:$0xff]  ;;  %638 = vst.msk [vmem:[%s333_s19] sm:$0x1] %vm624_vm3, %v839_v30 }
  0x11   : > { %v830_v17 = vld [vmem:[%s1152_s3] ss:$0 sm:$0xff]  ;;  %v414_v21 = vld [vmem:[%s1153_s4 + $0x8] sm:$0xff]  ;;  %v779_v25 = vld [vmem:[%s1153_s4 + $0x18] sm:$0xff]  ;;  %641 = vst.msk [vmem:[%s333_s19 + $0x11] sm:$0x1] %vm624_vm3, %v839_v30 }
  0x12   : > { %375 = vmatpush.msra.mxu1 %v353_v3  ;;  %v413_v20 = vld [vmem:[%s1153_s4] sm:$0xff]  ;;  %v799_v26 = vld [vmem:[%s1154_s5 + $0xf8] sm:$0xff]  ;;  %v798_v28 = vld [vmem:[%s1154_s5 + $0xf0] sm:$0xff] }
  0x13   : > { %v505_v27 = vld [vmem:[%s1154_s5 + $0x78] sm:$0xff]  ;;  %v504_v29 = vld [vmem:[%s1154_s5 + $0x70] sm:$0xff]  ;;  %v797_v31 = vld [vmem:[%s1154_s5 + $0xe8] sm:$0xff] }
  0x14   : > { %376 = vmatpush.msra.mxu1 %v352_v4  ;;  %v503_v32 = vld [vmem:[%s1154_s5 + $0x68] sm:$0xff]  ;;  %v815_v33 = vld [vmem:[%s1154_s5 + $0x178] sm:$0xff]  ;;  %v796_v34 = vld [vmem:[%s1154_s5 + $0xe0] sm:$0xff] }
  0x15   : > { %v502_v35 = vld [vmem:[%s1154_s5 + $0x60] sm:$0xff]  ;;  %590 = vmatpush.msra.mxu0 %v815_v33  ;;  %v814_v36 = vld [vmem:[%s1154_s5 + $0x170] sm:$0xff]  ;;  %v813_v37 = vld [vmem:[%s1154_s5 + $0x168] sm:$0xff] }
  0x16   : > { %377 = vmatpush.msra.mxu1 %v351_v5  ;;  %v795_v38 = vld [vmem:[%s1154_s5 + $0xd8] sm:$0xff]  ;;  %v812_v40 = vld [vmem:[%s1154_s5 + $0x160] sm:$0xff]  ;;  %v794_v41 = vld [vmem:[%s1154_s5 + $0xd0] sm:$0xff] }
  0x17   : > { %v501_v39 = vld [vmem:[%s1154_s5 + $0x58] sm:$0xff]  ;;  %591 = vmatpush.msra.mxu0 %v814_v36  ;;  %v500_v42 = vld [vmem:[%s1154_s5 + $0x50] sm:$0xff]  ;;  %v793_v44 = vld [vmem:[%s1154_s5 + $0xc8] sm:$0xff] }
  0x18   : > { %378 = vmatpush.msra.mxu1 %v350_v6  ;;  %v811_v43 = vld [vmem:[%s1154_s5 + $0x158] sm:$0xff]  ;;  %v499_v45 = vld [vmem:[%s1154_s5 + $0x48] sm:$0xff]  ;;  %v343_v46 = vld [vmem:[%s1014_s24] sm:$0xff] }
  0x19   : > { %592 = vmatpush.msra.mxu0 %v813_v37  ;;  %v810_v47 = vld [vmem:[%s1154_s5 + $0x150] sm:$0xff]  ;;  %346 = vst.msk [vmem:[#allocation2 + $0x1] sm:$0xff] %vm345_vm0, %v343_v46  ;;  %v792_v48 = vld [vmem:[%s1154_s5 + $0xc0] sm:$0xff]  ;;  %v809_v50 = vld [vmem:[%s1154_s5 + $0x148] sm:$0xff] }
  0x1a   : > { %379 = vmatpush.msra.mxu1 %v349_v7  ;;  %v498_v49 = vld [vmem:[%s1154_s5 + $0x40] sm:$0xff]  ;;  %v791_v51 = vld [vmem:[%s1154_s5 + $0xb8] sm:$0xff]  ;;  %v790_v54 = vld [vmem:[%s1154_s5 + $0xb0] sm:$0xff] }
  0x1b   : > { %768 = vmatmul.msk.f32.vlgmr.msra.gmra.mxu1 %vm345_vm0, %v348_v9  ;;  %593 = vmatpush.msra.mxu0 %v812_v40  ;;  %v497_v52 = vld [vmem:[%s1154_s5 + $0x38] sm:$0xff]  ;;  %v808_v53 = vld [vmem:[%s1154_s5 + $0x140] sm:$0xff]  ;;  %v496_v55 = vld [vmem:[%s1154_s5 + $0x30] sm:$0xff] }
  0x1c   : > { %401 = vmatpush.msrb.mxu1 %v776_v8  ;;  %v789_v57 = vld [vmem:[%s1154_s5 + $0xa8] sm:$0xff]  ;;  %v788_v59 = vld [vmem:[%s1154_s5 + $0xa0] sm:$0xff]  ;;  %v787_v2 = vld [vmem:[%s1154_s5 + $0x98] sm:$0xff] }
  0x1d   : > { %594 = vmatpush.msra.mxu0 %v811_v43  ;;  %v495_v58 = vld [vmem:[%s1154_s5 + $0x28] sm:$0xff]  ;;  %v494_v60 = vld [vmem:[%s1154_s5 + $0x20] sm:$0xff]  ;;  %v493_v3 = vld [vmem:[%s1154_s5 + $0x18] sm:$0xff] }
  0x1e   : > { %402 = vmatpush.msrb.mxu1 %v775_v10  ;;  %v807_v4 = vld [vmem:[%s1154_s5 + $0x138] sm:$0xff]  ;;  %v786_v5 = vld [vmem:[%s1154_s5 + $0x90] sm:$0xff]  ;;  %v785_v8 = vld [vmem:[%s1154_s5 + $0x88] sm:$0xff] }
  0x1f   : > { %595 = vmatpush.msra.mxu0 %v810_v47  ;;  %v492_v6 = vld [vmem:[%s1154_s5 + $0x10] sm:$0xff]  ;;  %v805_v10 = vld [vmem:[%s1154_s5 + $0x128] sm:$0xff] }
  0x20   : > { %403 = vmatpush.msrb.mxu1 %v774_v11  ;;  %v806_v7 = vld [vmem:[%s1154_s5 + $0x130] sm:$0xff]  ;;  %v784_v11 = vld [vmem:[%s1154_s5 + $0x80] sm:$0xff] }
  0x21   : > { %596 = vmatpush.msra.mxu0 %v809_v50 }
  0x22   : > { %404 = vmatpush.msrb.mxu1 %v773_v12  ;;  %v490_v12 = vld [vmem:[%s1154_s5] sm:$0xff] }
  0x23   : > { %597 = vmatpush.msra.mxu0 %v808_v53 }
  0x24   : > { %405 = vmatpush.msrb.mxu1 %v772_v13  ;;  %v344_v13 = vld [vmem:[%s1014_s24 + $0x8] sm:$0xff] }
  0x25   : > { %598 = vmatpush.msra.mxu0 %v807_v4  ;;  %347 = vst.msk [vmem:[#allocation2 + $0x9] sm:$0xff] %vm345_vm0, %v344_v13 }
  0x26   : > { %406 = vmatpush.msrb.mxu1 %v771_v14  ;;  %v804_v14 = vld [vmem:[%s1154_s5 + $0x120] sm:$0xff] }
  0x27   : > { %599 = vmatpush.msra.mxu0 %v806_v7 }
  0x28   : > { %407 = vmatpush.msrb.mxu1 %v770_v15  ;;  %v803_v15 = vld [vmem:[%s1154_s5 + $0x118] sm:$0xff] }
  0x29   : > { %600 = vmatpush.msra.mxu0 %v805_v10 }
  0x2a   : > { %408 = vmatpush.msrb.mxu1 %v769_v16  ;;  %v802_v16 = vld [vmem:[%s1154_s5 + $0x110] sm:$0xff] }
  0x2b   : > { %777 = vmatmul.msk.f32.vlgmr.msrb.gmra.mxu1 %vm345_vm0, %v348_v9  ;;  %v491_v9 = vld [vmem:[%s1154_s5 + $0x8] sm:$0xff]  ;;  %601 = vmatpush.msra.mxu0 %v804_v14 }
  0x2d   : > { %602 = vmatpush.msra.mxu0 %v803_v15 }
  0x2f   : > { %603 = vmatpush.msra.mxu0 %v802_v16 }
  0x98   : > { %v381_v18 = vpop.f32.mrf.mxu1 }
  0x99   : > { %v382_v19 = vadd.f32 %v830_v17, %v381_v18  ;;  %v800_v18 = vld [vmem:[%s1154_s5 + $0x100] sm:$0xff] }
  0x9b   : > { %469 = vmatpush.msra.mxu3 %v382_v19 }
  0x9c   : > { %782 = vmatmul.msk.f32.vlgmr.msra.gmra.mxu3 %vm418_vm1, %v413_v20 }
  0x9d   : > { %548 = vmatpush.msrb.mxu3 %v505_v27 }
  0x9f   : > { %549 = vmatpush.msrb.mxu3 %v504_v29 }
  0xa1   : > { %550 = vmatpush.msrb.mxu3 %v503_v32 }
  0xa3   : > { %551 = vmatpush.msrb.mxu3 %v502_v35 }
  0xa4   : > { %783 = vmatmul.msk.f32.gmra.mxu3 %vm418_vm1, %v414_v21 }
  0xa5   : > { %552 = vmatpush.msrb.mxu3 %v501_v39 }
  0xa7   : > { %553 = vmatpush.msrb.mxu3 %v500_v42 }
  0xa8   : > { %v410_v22 = vpop.f32.mrf.mxu1 }
  0xa9   : > { %v411_v23 = vadd.f32 %v830_v17, %v410_v22  ;;  %554 = vmatpush.msrb.mxu3 %v499_v45  ;;  %v801_v17 = vld [vmem:[%s1154_s5 + $0x108] sm:$0xff] }
  0xaa   : > { %604 = vmatpush.msra.mxu0 %v801_v17 }
  0xab   : > { %440 = vmatpush.msra.mxu2 %v411_v23  ;;  %555 = vmatpush.msrb.mxu3 %v498_v49 }
  0xac   : > { %780 = vmatmul.msk.f32.vlgmr.msra.gmra.mxu2 %vm418_vm1, %v778_v24  ;;  %605 = vmatpush.msra.mxu0 %v800_v18 }
  0xad   : > { %525 = vmatpush.msrb.mxu2 %v799_v26  ;;  %556 = vmatpush.msrb.mxu3 %v497_v52 }
  0xaf   : > { %526 = vmatpush.msrb.mxu2 %v798_v28  ;;  %557 = vmatpush.msrb.mxu3 %v496_v55 }
  0xb1   : > { %527 = vmatpush.msrb.mxu2 %v797_v31  ;;  %558 = vmatpush.msrb.mxu3 %v495_v58 }
  0xb3   : > { %528 = vmatpush.msrb.mxu2 %v796_v34  ;;  %559 = vmatpush.msrb.mxu3 %v494_v60 }
  0xb4   : > { %781 = vmatmul.msk.f32.gmra.mxu2 %vm418_vm1, %v779_v25 }
  0xb5   : > { %529 = vmatpush.msrb.mxu2 %v795_v38  ;;  %560 = vmatpush.msrb.mxu3 %v493_v3 }
  0xb7   : > { %530 = vmatpush.msrb.mxu2 %v794_v41  ;;  %561 = vmatpush.msrb.mxu3 %v492_v6 }
  0xb9   : > { %531 = vmatpush.msrb.mxu2 %v793_v44  ;;  %562 = vmatpush.msrb.mxu3 %v491_v9 }
  0xbb   : > { %532 = vmatpush.msrb.mxu2 %v792_v48  ;;  %563 = vmatpush.msrb.mxu3 %v490_v12 }
  0xbd   : > { %533 = vmatpush.msrb.mxu2 %v791_v51 }
  0xbf   : > { %534 = vmatpush.msrb.mxu2 %v790_v54 }
  0xc1   : > { %535 = vmatpush.msrb.mxu2 %v789_v57 }
  0xc3   : > { %536 = vmatpush.msrb.mxu2 %v788_v59 }
  0xc5   : > { %537 = vmatpush.msrb.mxu2 %v787_v2 }
  0xc7   : > { %538 = vmatpush.msrb.mxu2 %v786_v5 }
  0xc9   : > { %539 = vmatpush.msrb.mxu2 %v785_v8 }
  0xcb   : > { %540 = vmatpush.msrb.mxu2 %v784_v11 }
 0x11f   : > { %v471_v56 = vpop.f32.mrf.mxu3 }
 0x127   : > { %v474_v63 = vpop.f32.mrf.mxu3 }
 0x12f   : > { %v442_v61 = vpop.f32.mrf.mxu2 }
 0x130   : > { %v472_v62 = vadd.f32 %v471_v56, %v442_v61 }
 0x132   : > { %479 = vrot.lane.b32.xlu0 %v472_v62, %s840_s22 }
 0x137   : > { %v445_v0 = vpop.f32.mrf.mxu2 }
 0x138   : > { %v475_v1 = vadd.f32 %v474_v63, %v445_v0 }
 0x13a   : > { %481 = vrot.lane.b32.xlu0 %v475_v1, %s840_s22  ;;  %s336_s22 = scalar_lea.vmem %s1156_s7, %s1159_s28 }
 0x1a4   : > { %v480_v19 = vpop.permute.xlu0 %479 }
 0x1a5   : > { %486 = vst.msk [vmem:[#allocation2 + $0x1] sm:$0xff] %vm485_vm2, %v480_v19 }
 0x1ac   : > { %v482_v20 = vpop.permute.xlu0 %481  ;;  %v506_v21 = vld [vmem:[#allocation2 + $0x1] sm:$0xff] }
 0x1ad   : > { %v488_v22 = vld [vmem:[#allocation2] sm:$0xff]  ;;  %487 = vst.msk [vmem:[#allocation2 + $0x9] sm:$0xff] %vm485_vm2, %v482_v20  ;;  %541 = vmatmul.f32.vlgmr.msrb.gmra.mxu2 %v506_v21 }
 0x1ae   : > { %564 = vmatmul.f32.vlgmr.msrb.gmra.mxu3 %v488_v22 }
 0x1b4   : > { %v507_v23 = vld [vmem:[#allocation2 + $0x9] sm:$0xff] }
 0x1b5   : > { %v489_v24 = vld [vmem:[#allocation2 + $0x8] sm:$0xff]  ;;  %544 = vmatmul.f32.gmra.mxu2 %v507_v23 }
 0x1b6   : > { %v571_v25 = vld [vmem:[#allocation2 + $0x2] sm:$0xff]  ;;  %567 = vmatmul.f32.gmra.mxu3 %v489_v24  ;;  %v572_v26 = vld [vmem:[#allocation2 + $0xa] sm:$0xff] }
 0x1b7   : > { %606 = vmatmul.f32.vlgmr.msra.gmra.mxu0 %v571_v25 }
 0x1bf   : > { %609 = vmatmul.f32.gmra.mxu0 %v572_v26 }
 0x230   : > { %v542_v27 = vpop.f32.mrf.mxu2 }
 0x231   : > { %v565_v28 = vpop.f32.mrf.mxu3 }
 0x232   : > { %v566_v29 = vadd.f32 %v565_v28, %v542_v27 }
 0x234   : > { %v607_v31 = vpop.f32.mrf.mxu0 }
 0x235   : > { %v613_v32 = vadd.f32 %v607_v31, %v566_v29 }
 0x237   : > { %639 = vst.msk [vmem:[%s333_s19 + $0x1] sm:$0xff] %vm345_vm0, %v613_v32  ;;  %v626_v37 = vmul.f32 %v613_v32, %v613_v32  ;;  %v615_v39 = vsel %vm345_vm0, %v613_v32, 0.0 }
 0x238   : > { %v545_v33 = vpop.f32.mrf.mxu2 }
 0x239   : > { %v568_v34 = vpop.f32.mrf.mxu3  ;;  %v628_v42 = vsel %vm345_vm0, %v626_v37, 0.0 }
 0x23a   : > { %v569_v35 = vadd.f32 %v568_v34, %v545_v33 }
 0x23c   : > { %v610_v36 = vpop.f32.mrf.mxu0 }
 0x23d   : > { %v614_v38 = vadd.f32 %v610_v36, %v569_v35 }
 0x23f   : > { %v616_v40 = vsel %vm345_vm0, %v614_v38, 0.0  ;;  %v627_v41 = vmul.f32 %v614_v38, %v614_v38  ;;  %640 = vst.msk [vmem:[%s333_s19 + $0x9] sm:$0xff] %vm345_vm0, %v614_v38 }
 0x240   : > { %v617_v30 = vadd.f32 %v616_v40, %v615_v39 }
 0x241   : > { %v629_v43 = vsel %vm345_vm0, %v627_v41, 0.0 }
 0x242   : > { %v618_v44 = vrot.slane %v617_v30, 4  ;;  %v630_v45 = vadd.f32 %v629_v43, %v628_v42 }
 0x244   : > { %v619_v46 = vadd.f32 %v618_v44, %v617_v30  ;;  %v631_v47 = vrot.slane %v630_v45, 4 }
 0x246   : > { %v620_v48 = vrot.slane %v619_v46, 2  ;;  %v632_v49 = vadd.f32 %v631_v47, %v630_v45 }
 0x248   : > { %v621_v50 = vadd.f32 %v620_v48, %v619_v46  ;;  %v633_v51 = vrot.slane %v632_v49, 2 }
 0x24a   : > { %v622_v52 = vrot.slane %v621_v50, 1  ;;  %v634_v53 = vadd.f32 %v633_v51, %v632_v49 }
 0x24c   : > { %v623_v54 = vadd.f32 %v622_v52, %v621_v50  ;;  %v635_v55 = vrot.slane %v634_v53, 1 }
 0x24e   : > { %625 = vst.msk [vmem:[%s336_s22] sm:$0x1] %vm624_vm3, %v623_v54  ;;  %v636_v56 = vadd.f32 %v635_v55, %v634_v53 }
 0x250   : > { %637 = vst.msk [vmem:[%s339_s26] sm:$0x1] %vm624_vm3, %v636_v56 }
 0x251 PF: > { %s19_s27 = sadd.s32 1, %s837_s27  }
 0x252   : > { %p16_p4 = scmp.ge.s32.totalorder %s19_s27, 4  }
 0x254   :  { %18 = sbr.rel (!%p16_p4) target bundleno = 1 (0x1), region = 105 }

// kernel: upscaling_forward.5
= control target key start
LH: loop header
LB: loop body
LE: loop exit
PB: predicated region body
PF: predicated region fallthrough
CT: control target
= control target key end

     0   :  { %s255_s12 = smov 0   ;;  %s291_s0 = inlined_call_operand.vmem [shape: f32[16,128], index: 0, kind: input, shape index: {}]   ;;  %s292_s1 = inlined_call_operand.vmem [shape: f32[1,128], index: 1, kind: input, shape index: {}]   ;;  %s293_s2 = inlined_call_operand.vmem [shape: f32[1,128], index: 2, kind: input, shape index: {}]   ;;  %s294_s3 = inlined_call_operand.vmem [shape: f32[16,128], index: 3, kind: output, shape index: {}]  }
   0x1 LB: > { %s232_s13 = sadd.s32 4294967295, %s257_s12   ;;  %p236_p0 = scmp.ge.s32.totalorder %s257_s12, 1  ;;  %s257_s12 = sphi %s255_s12, %s13_s12  }
   0x2   : > { %p136_p1 = scmp.lt.s32.totalorder %s257_s12, 3 }
   0x4   : > { %p137_p2 = pnand %p236_p0, %p136_p1 }
   0x5   : > { %p158_p3 = scmp.lt.s32.totalorder (!%p137_p2), %s232_s13, 1 }
   0x6   : > { %140 = sbr.rel (%p137_p2) target bundleno = 22 (0x16), region = 32 }
   0xb   : > { %s296_s13 = smov (!%p158_p3, %s232_s13), 1  ;;  %v249_v0 = vld [vmem:[%s292_s1] ss:$0 sm:$0xff] }
   0xc   : > { %s237_s16 = sshll.u32 %s296_s13, 3  ;;  %v250_v1 = vld [vmem:[%s293_s2] ss:$0 sm:$0xff] }
   0xd   : > { %s161_s19 = scalar_lea.vmem %s291_s0, %s237_s16  ;;  %s165_s24 = scalar_lea.vmem %s294_s3, %s237_s16 }
   0xe   : > { %v166_v2 = vld [vmem:[%s161_s19] sm:$0xff] }
   0xf   : > { %v171_v3 = vmul.f32 %v249_v0, %v166_v2 }
  0x11   : > { %v176_v4 = vadd.f32 %v250_v1, %v171_v3 }
  0x13   : > { %v177_v5 = vmax.f32 %v176_v4, 0.0 }
  0x15   : > { %178 = vst [vmem:[%s165_s24] sm:$0xff] %v177_v5 }
  0x16 PF: > { %s13_s12 = sadd.s32 1, %s257_s12  }
  0x17   : > { %p10_p4 = scmp.ge.s32.totalorder %s13_s12, 4  }
  0x19   :  { %12 = sbr.rel (!%p10_p4) target bundleno = 1 (0x1), region = 62 }

</bundles_post_ra>
